<compile_context>
chip_gen: v7x
topology: tpu7x:2x2x1
jax: 0.10.0
libtpu: 0.0.40
codegen_flags: <defaults>
</compile_context>

<pallas_src>
import functools

import jax
import jax.numpy as jnp
import numpy as np
from jax.experimental import pallas as pl
from jax.experimental.pallas import tpu as pltpu

INIT_DIM = 10   # 4 (obj.x) + 3 (actions) + 3 (tar_scores)
GEO_DIM = 2
NEG = -1.0e30   # additive mask value for missing edges


def _round_up(x, m):
    return ((x + m - 1) // m) * m


def _dot(a, b):
    return jnp.dot(a, b, preferred_element_type=jnp.float32)


# ----------------------------------------------------------------------------
# Kernel: both Q heads fused (lane-stacked activations, block-diagonal weights)
# ----------------------------------------------------------------------------
def critic_kernel(cfg, data_ref, wall_ref, cls_ref, p_ref, q_ref):
    N, B, E, H = cfg["N"], cfg["B"], cfg["E"], cfg["H"]
    offs = cfg["offsets"]
    H2, H4, E2 = 2 * H, 4 * H, 2 * E
    c_hot = INIT_DIM + GEO_DIM          # one-hot room columns start
    c_msk = c_hot + B                   # additive edge-mask columns start

    def P(name):                        # static sub-block of the parameter slab
        r0, r, c = offs[name]
        return p_ref[r0:r0 + r, 0:c]

    data = data_ref[...]                                          # (N, 12+B+N)
    onehot = data[:, c_hot:c_hot + B]                             # (N, B) node -> room
    neg = data[:, c_msk:c_msk + N]                                # (N_tgt, N_src) 0 / -1e30
    has_in = jnp.max(neg, axis=1, keepdims=True) > -1.0           # (N, 1) node has an edge

    # ---- encoders (both heads at once) -------------------------------------
    # layer 1 of init_enc & geo_enc in one matmul: lanes [init1|init2|geo1|geo2]
    enc1 = jnp.tanh(_dot(data[:, 0:INIT_DIM + GEO_DIM], P("enc1_w")) + P("enc1_b"))
    init_h = enc1[:, 0:H2]                                        # (N, 2H)
    geo_h = enc1[:, H2:H2 + E2]                                   # (N, 2E)
    h = jnp.tanh(_dot(init_h, P("init_w2")) + P("init_b2"))       # (N, 2H) obj init feat

    # conditioning lanes [cls1|wall1|geo1|cls2|wall2|geo2] built without lane concat
    cls_h = jnp.tanh(cls_ref[...])                                # (N, 2E) tanh(Embedding)
    wall_h = jnp.tanh(_dot(wall_ref[...], P("wall_w1")) + P("wall_b1"))   # (B, 2E)
    wall_node = _dot(onehot, wall_h)                              # (N, 2E) per-node gather
    cond = jnp.tanh(_dot(cls_h, P("cls_w")) + _dot(wall_node, P("wall_w2"))
                    + _dot(geo_h, P("geo_w2")) + P("cond_b"))     # (N, 6E)

    # ---- EdgeConv(aggr='max') on x = [h | cond], both heads lane-stacked ----
    def edge_conv(h, wh, wc, b1, w2, b2):
        # fused first layer: result lanes [a1 | a2 | bm1 | bm2]
        ab = _dot(h, P(wh)) + _dot(cond, P(wc))                   # (N, 4H)
        a, bm = ab[:, 0:H2], ab[:, H2:H4]
        base = a - bm + P(b1)                                     # (N, 2H)
        pre = base[:, None, :] + bm[None, :, :]                   # (tgt, src, 2H)
        msg = _dot(jnp.tanh(pre).reshape(N * N, H2), P(w2)) + P(b2)
        msg = msg.reshape(N, N, H2) + neg[:, :, None]             # mask missing edges
        out = jnp.max(msg, axis=1)                                # max over sources
        return jnp.where(has_in, out, 0.0)                        # isolated nodes -> 0

    h = jnp.tanh(edge_conv(h, "m1_wh", "m1_wc", "m1_b1", "m1_w2", "m1_b2"))
    h = jnp.tanh(edge_conv(h, "m2_wh", "m2_wc", "m2_b1", "m2_w2", "m2_b2"))

    # ---- critic tail: Linear([x | cond]) -> Tanh -> Linear(H, 1), both heads --
    ht = jnp.tanh(_dot(h, P("t_wh")) + _dot(cond, P("t_wc")) + P("t_b1"))   # (N, 2H)
    q = _dot(ht, P("t_w2")) + P("t_b2")                                     # (N, 2)
    q_ref[...] = q.astype(q_ref.dtype)


# ----------------------------------------------------------------------------
# Wrapper: one fused pallas_call for both heads
# ----------------------------------------------------------------------------
def critic_forward(data, wall, cls_both, pslab, cfg):
    N = cfg["N"]
    kernel = functools.partial(critic_kernel, cfg)
    q = pl.pallas_call(
        kernel,
        out_shape=jax.ShapeDtypeStruct((N, 2), jnp.float32),
        grid=(1,),
        in_specs=[
            pl.BlockSpec(data.shape, lambda i: (0, 0)),      # node-feature slab + edge mask
            pl.BlockSpec(wall.shape, lambda i: (0, 0)),      # per-room wall scalar
            pl.BlockSpec(cls_both.shape, lambda i: (0, 0)),  # class embeddings (both heads)
            pl.BlockSpec(pslab.shape, lambda i: (0, 0)),     # fused parameter slab
        ],
        out_specs=pl.BlockSpec((N, 2), lambda i: (0, 0)),
        compiler_params=pltpu.CompilerParams(dimension_semantics=("arbitrary",)),
    )(data, wall, cls_both, pslab)
    return q[:, 0:1], q[:, 1:2]


# ----------------------------------------------------------------------------
# Parameter layout / packing (both heads fused into one (R, 4H) slab)
# ----------------------------------------------------------------------------
def build_param_layout(H, E):
    H2, H4, E2, E6 = 2 * H, 4 * H, 2 * E, 6 * E
    blocks = [
        ("enc1_w", (INIT_DIM + GEO_DIM, H2 + E2)), ("enc1_b", (1, H2 + E2)),
        ("init_w2", (H2, H2)), ("init_b2", (1, H2)),
        ("cls_w", (E2, E6)),
        ("wall_w1", (1, E2)), ("wall_b1", (1, E2)), ("wall_w2", (E2, E6)),
        ("geo_w2", (E2, E6)), ("cond_b", (1, E6)),
        ("m1_wh", (H2, H4)), ("m1_wc", (E6, H4)), ("m1_b1", (1, H2)),
        ("m1_w2", (H2, H2)), ("m1_b2", (1, H2)),
        ("m2_wh", (H2, H4)), ("m2_wc", (E6, H4)), ("m2_b1", (1, H2)),
        ("m2_w2", (H2, H2)), ("m2_b2", (1, H2)),
        ("t_wh", (H2, H2)), ("t_wc", (E6, H2)), ("t_b1", (1, H2)),
        ("t_w2", (H2, 2)), ("t_b2", (1, 2)),
    ]
    offsets, row = {}, 0
    for name, (r, c) in blocks:
        offsets[name] = (row, r, c)
        row += _round_up(r, 8)          # keep every block 8-sublane aligned
    return offsets, _round_up(row, 8), H4        # (offsets, R, C)


def pack_params(p1, p2, H, E, offsets, R, C):
    E3 = 3 * E
    F = H + E3
    slab = np.zeros((R, C), np.float32)

    def put(name, arr):
        r0, r, c = offsets[name]
        a = np.asarray(arr, np.float32)
        assert a.shape == (r, c), (name, a.shape, (r, c))
        slab[r0:r0 + r, 0:c] = a

    def diag2(a1, a2):                  # block-diagonal over the two heads
        a1, a2 = np.asarray(a1, np.float32), np.asarray(a2, np.float32)
        out = np.zeros((a1.shape[0] + a2.shape[0], a1.shape[1] + a2.shape[1]), np.float32)
        out[:a1.shape[0], :a1.shape[1]] = a1
        out[a1.shape[0]:, a1.shape[1]:] = a2
        return out

    def cat2(a1, a2):                   # lane-stack the two heads
        return np.concatenate([np.asarray(a1, np.float32),
                               np.asarray(a2, np.float32)], axis=1)

    # init/geo encoder layer 1: input [obj_x|actions|tar|geo](12)
    # -> output lanes [init1 (H) | init2 (H) | geo1 (E) | geo2 (E)]
    enc1_w = np.zeros((INIT_DIM + GEO_DIM, 2 * H + 2 * E), np.float32)
    enc1_w[0:INIT_DIM, 0:H] = np.asarray(p1["init_w1"])
    enc1_w[0:INIT_DIM, H:2 * H] = np.asarray(p2["init_w1"])
    enc1_w[INIT_DIM:, 2 * H:2 * H + E] = np.asarray(p1["geo_w1"])
    enc1_w[INIT_DIM:, 2 * H + E:2 * H + 2 * E] = np.asarray(p2["geo_w1"])
    put("enc1_w", enc1_w)
    put("enc1_b", np.concatenate([np.asarray(p1["init_b1"]), np.asarray(p2["init_b1"]),
                                  np.asarray(p1["geo_b1"]), np.asarray(p2["geo_b1"])], axis=1))
    put("init_w2", diag2(p1["init_w2"], p2["init_w2"]))
    put("init_b2", cat2(p1["init_b2"], p2["init_b2"]))

    # cond lanes: [cls1 | wall1 | geo1 | cls2 | wall2 | geo2], each E wide
    def cond_widen(w_h1, w_h2, kind):   # (E, E) per head -> (2E, 6E)
        out = np.zeros((2 * E, 6 * E), np.float32)
        off = {"cls": 0, "wall": E, "geo": 2 * E}[kind]
        out[0:E, off:off + E] = np.asarray(w_h1)
        out[E:2 * E, E3 + off:E3 + off + E] = np.asarray(w_h2)
        return out

    put("cls_w", cond_widen(p1["cls_w"], p2["cls_w"], "cls"))
    put("wall_w1", cat2(p1["wall_w1"], p2["wall_w1"]))
    put("wall_b1", cat2(p1["wall_b1"], p2["wall_b1"]))
    put("wall_w2", cond_widen(p1["wall_w2"], p2["wall_w2"], "wall"))
    put("geo_w2", cond_widen(p1["geo_w2"], p2["geo_w2"], "geo"))
    cond_b = np.zeros((1, 6 * E), np.float32)
    for kind, (b_h1, b_h2) in (("cls", (p1["cls_b"], p2["cls_b"])),
                               ("wall", (p1["wall_b2"], p2["wall_b2"])),
                               ("geo", (p1["geo_b2"], p2["geo_b2"]))):
        off = {"cls": 0, "wall": E, "geo": 2 * E}[kind]
        cond_b[0, off:off + E] = np.asarray(b_h1)
        cond_b[0, E3 + off:E3 + off + E] = np.asarray(b_h2)
    put("cond_b", cond_b)

    # EdgeConv mlps: W1 (2F, H) split into self/diff halves and h/cond row groups;
    # fused output lanes are [a1 | a2 | bm1 | bm2] (4H wide).
    def pack_conv(key):
        wh = np.zeros((2 * H, 4 * H), np.float32)
        wc = np.zeros((6 * E, 4 * H), np.float32)
        for hd, p in enumerate((p1, p2)):
            w1 = np.asarray(p[key + "_w1"], np.float32)           # (2F, H)
            w_self, w_diff = w1[0:F], w1[F:2 * F]
            a_cols = slice(hd * H, hd * H + H)
            b_cols = slice(2 * H + hd * H, 2 * H + hd * H + H)
            wh[hd * H:hd * H + H, a_cols] = w_self[0:H]
            wh[hd * H:hd * H + H, b_cols] = w_diff[0:H]
            wc[hd * E3:(hd + 1) * E3, a_cols] = w_self[H:F]
            wc[hd * E3:(hd + 1) * E3, b_cols] = w_diff[H:F]
        put(key + "_wh", wh)
        put(key + "_wc", wc)
        put(key + "_b1", cat2(p1[key + "_b1"], p2[key + "_b1"]))
        put(key + "_w2", diag2(p1[key + "_w2"], p2[key + "_w2"]))
        put(key + "_b2", cat2(p1[key + "_b2"], p2[key + "_b2"]))

    pack_conv("m1")
    pack_conv("m2")

    # critic tail
    t_wh = np.zeros((2 * H, 2 * H), np.float32)
    t_wc = np.zeros((6 * E, 2 * H), np.float32)
    for hd, p in enumerate((p1, p2)):
        w1 = np.asarray(p["t_w1"], np.float32)                    # (F, H)
        t_wh[hd * H:hd * H + H, hd * H:hd * H + H] = w1[0:H]
        t_wc[hd * E3:(hd + 1) * E3, hd * H:hd * H + H] = w1[H:F]
    put("t_wh", t_wh)
    put("t_wc", t_wc)
    put("t_b1", cat2(p1["t_b1"], p2["t_b1"]))
    put("t_w2", diag2(p1["t_w2"], p2["t_w2"]))
    put("t_b2", cat2(p1["t_b2"], p2["t_b2"]))
    return jnp.asarray(slab)


# ----------------------------------------------------------------------------
# Deterministic parameter init (shapes dictated by Critic.__init__)
# ----------------------------------------------------------------------------
def _init_linear(key, fan_in, fan_out):
    k1, k2 = jax.random.split(key)
    w = jax.random.normal(k1, (fan_in, fan_out), jnp.float32) / jnp.sqrt(float(fan_in))
    b = jax.random.normal(k2, (1, fan_out), jnp.float32) * 0.01
    return w, b


def make_q_params(key, H, E, class_num):
    F = H + 3 * E
    ks = jax.random.split(key, 14)
    p = {}
    p["emb_tab"] = jax.random.normal(ks[0], (class_num, E), jnp.float32) * 0.1
    p["cls_w"], p["cls_b"] = _init_linear(ks[1], E, E)
    p["wall_w1"], p["wall_b1"] = _init_linear(ks[2], 1, E)
    p["wall_w2"], p["wall_b2"] = _init_linear(ks[3], E, E)
    p["geo_w1"], p["geo_b1"] = _init_linear(ks[4], GEO_DIM, E)
    p["geo_w2"], p["geo_b2"] = _init_linear(ks[5], E, E)
    p["init_w1"], p["init_b1"] = _init_linear(ks[6], INIT_DIM, H)
    p["init_w2"], p["init_b2"] = _init_linear(ks[7], H, H)
    p["m1_w1"], p["m1_b1"] = _init_linear(ks[8], 2 * F, H)
    p["m1_w2"], p["m1_b2"] = _init_linear(ks[9], H, H)
    p["m2_w1"], p["m2_b1"] = _init_linear(ks[10], 2 * F, H)
    p["m2_w2"], p["m2_b2"] = _init_linear(ks[11], H, H)
    p["t_w1"], p["t_b1"] = _init_linear(ks[12], F, H)
    p["t_w2"], p["t_b2"] = _init_linear(ks[13], H, 1)
    return p


# ----------------------------------------------------------------------------
# Main
# ----------------------------------------------------------------------------
if __name__ == "__main__":
    N = 8            # total objects (nodes)
    B = 2            # rooms (graphs) in the batch
    CLASS_NUM = 10
    HIDDEN = 32
    EMBED = 16

    key = jax.random.PRNGKey(0)
    k_data, k_q1, k_q2 = jax.random.split(key, 3)
    kd = jax.random.split(k_data, 6)

    obj_x = jax.random.normal(kd[0], (N, 4), jnp.float32)
    actions = jax.random.normal(kd[1], (N, 3), jnp.float32)
    # TODO(synk): stand-in for target_score.get_score (external diffusion score network)
    tar_scores = jax.random.normal(kd[2], (N, 3), jnp.float32)
    geo = jax.random.normal(kd[3], (N, GEO_DIM), jnp.float32)
    wall_batch = jax.random.normal(kd[4], (B, 1), jnp.float32)
    category = jax.random.randint(kd[5], (N,), 0, CLASS_NUM)

    # obj_batch.batch -> one-hot room membership (N // B objects per room)
    batch_idx = np.repeat(np.arange(B), N // B)
    batch_onehot = jax.nn.one_hot(jnp.asarray(batch_idx), B, dtype=jnp.float32)

    # edge_index: fully connected within each room, no self-loops; folded into
    # the node-feature slab as an additive [tgt, src] mask
    same_room = batch_idx[:, None] == batch_idx[None, :]
    has_edge = same_room & (~np.eye(N, dtype=bool))
    neg_mask = np.where(has_edge, 0.0, NEG).astype(np.float32)

    # shared node-feature slab: [obj_x | actions | tar_scores | geo | onehot | edge mask]
    data_slab = jnp.concatenate(
        [obj_x, actions, tar_scores, geo, batch_onehot, jnp.asarray(neg_mask)], axis=1)

    offsets, R, C = build_param_layout(HIDDEN, EMBED)
    p1 = make_q_params(k_q1, HIDDEN, EMBED, CLASS_NUM)
    p2 = make_q_params(k_q2, HIDDEN, EMBED, CLASS_NUM)
    pslab = pack_params(p1, p2, HIDDEN, EMBED, offsets, R, C)                 # (R, 4H)
    # Embedding lookup (pure gather) done in the wrapper, both heads lane-stacked
    cls_both = jnp.concatenate([p1["emb_tab"][category], p2["emb_tab"][category]], axis=1)

    cfg = dict(N=N, B=B, E=EMBED, H=HIDDEN, offsets=offsets)
    q1, q2 = critic_forward(data_slab, wall_batch, cls_both, pslab, cfg)
    jax.block_until_ready((q1, q2))

    assert q1.shape == (N, 1) and q2.shape == (N, 1)
    assert bool(jnp.all(jnp.isfinite(q1))) and bool(jnp.all(jnp.isfinite(q2)))
    print("KERNEL_OK")
</pallas_src>

<mosaic_0001>
module attributes {stable_mosaic.version = 11 : i64} {
  func.func @critic_kernel(%arg0: i32, %arg1: memref<8x22xf32, #tpu.memory_space<vmem>>, %arg2: memref<2x1xf32, #tpu.memory_space<vmem>>, %arg3: memref<8x32xf32, #tpu.memory_space<vmem>>, %arg4: memref<936x128xf32, #tpu.memory_space<vmem>>, %arg5: memref<8x2xf32, #tpu.memory_space<vmem>>) attributes {dimension_semantics = [#tpu.dimension_semantics<arbitrary>], iteration_bounds = array<i64: 1>, scalar_prefetch = 0 : i64, scratch_operands = 0 : i64, tpu.core_type = #tpu.core_type<tc>, window_params = [{pipeline_mode = #tpu.pipeline_mode<synchronous>, transform_indices = @transform_0, window_bounds = array<i64: 8, 22>}, {pipeline_mode = #tpu.pipeline_mode<synchronous>, transform_indices = @transform_1, window_bounds = array<i64: 2, 1>}, {pipeline_mode = #tpu.pipeline_mode<synchronous>, transform_indices = @transform_2, window_bounds = array<i64: 8, 32>}, {pipeline_mode = #tpu.pipeline_mode<synchronous>, transform_indices = @transform_3, window_bounds = array<i64: 936, 128>}, {pipeline_mode = #tpu.pipeline_mode<synchronous>, transform_indices = @transform_4, window_bounds = array<i64: 8, 2>}]} {
    %c0 = arith.constant 0 : index
    %c0_0 = arith.constant 0 : index
    %0 = vector.load %arg1[%c0, %c0_0] : memref<8x22xf32, #tpu.memory_space<vmem>>, vector<8x22xf32>
    %1 = vector.extract_strided_slice %0 {offsets = [0, 12], sizes = [8, 2], strides = [1, 1]} : vector<8x22xf32> to vector<8x2xf32>
    %2 = vector.extract_strided_slice %0 {offsets = [0, 14], sizes = [8, 8], strides = [1, 1]} : vector<8x22xf32> to vector<8x8xf32>
    %cst = arith.constant dense<0xFF800000> : vector<8xf32>
    %3 = vector.multi_reduction <maximumf>, %2, %cst [1] : vector<8x8xf32> to vector<8xf32>
    %4 = vector.shape_cast %3 : vector<8xf32> to vector<8x1xf32>
    %cst_1 = arith.constant -1.000000e+00 : f32
    %5 = vector.broadcast %cst_1 : f32 to vector<8x1xf32>
    %6 = arith.cmpf ogt, %4, %5 : vector<8x1xf32>
    %7 = vector.extract_strided_slice %0 {offsets = [0, 0], sizes = [8, 12], strides = [1, 1]} : vector<8x22xf32> to vector<8x12xf32>
    %c0_2 = arith.constant 0 : index
    %c0_3 = arith.constant 0 : index
    %8 = vector.load %arg4[%c0_2, %c0_3] : memref<936x128xf32, #tpu.memory_space<vmem>>, vector<12x96xf32>
    %cst_4 = arith.constant dense<0.000000e+00> : vector<8x96xf32>
    %9 = tpu.matmul %7, %8, %cst_4 {dimension_numbers = #tpu.dot_dimension_numbers<[1], [0], [0], [1], [0, 0, 1, 1], [], []>} : vector<8x12xf32>, vector<12x96xf32>, vector<8x96xf32> -> vector<8x96xf32>
    %c16 = arith.constant 16 : index
    %c0_5 = arith.constant 0 : index
    %10 = vector.load %arg4[%c16, %c0_5] : memref<936x128xf32, #tpu.memory_space<vmem>>, vector<1x96xf32>
    %11 = vector.broadcast %10 : vector<1x96xf32> to vector<8x96xf32>
    %12 = arith.addf %9, %11 : vector<8x96xf32>
    %13 = math.tanh %12 : vector<8x96xf32>
    %14 = vector.extract_strided_slice %13 {offsets = [0, 0], sizes = [8, 64], strides = [1, 1]} : vector<8x96xf32> to vector<8x64xf32>
    %15 = vector.extract_strided_slice %13 {offsets = [0, 64], sizes = [8, 32], strides = [1, 1]} : vector<8x96xf32> to vector<8x32xf32>
    %c24 = arith.constant 24 : index
    %c0_6 = arith.constant 0 : index
    %16 = vector.load %arg4[%c24, %c0_6] : memref<936x128xf32, #tpu.memory_space<vmem>>, vector<64x64xf32>
    %cst_7 = arith.constant dense<0.000000e+00> : vector<8x64xf32>
    %17 = tpu.matmul %14, %16, %cst_7 {dimension_numbers = #tpu.dot_dimension_numbers<[1], [0], [0], [1], [0, 0, 1, 1], [], []>} : vector<8x64xf32>, vector<64x64xf32>, vector<8x64xf32> -> vector<8x64xf32>
    %c88 = arith.constant 88 : index
    %c0_8 = arith.constant 0 : index
    %18 = vector.load %arg4[%c88, %c0_8] : memref<936x128xf32, #tpu.memory_space<vmem>>, vector<1x64xf32>
    %19 = vector.broadcast %18 : vector<1x64xf32> to vector<8x64xf32>
    %20 = arith.addf %17, %19 : vector<8x64xf32>
    %21 = math.tanh %20 : vector<8x64xf32>
    %c0_9 = arith.constant 0 : index
    %c0_10 = arith.constant 0 : index
    %22 = vector.load %arg3[%c0_9, %c0_10] : memref<8x32xf32, #tpu.memory_space<vmem>>, vector<8x32xf32>
    %23 = math.tanh %22 : vector<8x32xf32>
    %c0_11 = arith.constant 0 : index
    %c0_12 = arith.constant 0 : index
    %24 = vector.load %arg2[%c0_11, %c0_12] : memref<2x1xf32, #tpu.memory_space<vmem>>, vector<2x1xf32>
    %c128 = arith.constant 128 : index
    %c0_13 = arith.constant 0 : index
    %25 = vector.load %arg4[%c128, %c0_13] : memref<936x128xf32, #tpu.memory_space<vmem>>, vector<1x32xf32>
    %cst_14 = arith.constant dense<0.000000e+00> : vector<2x32xf32>
    %26 = tpu.matmul %24, %25, %cst_14 {dimension_numbers = #tpu.dot_dimension_numbers<[1], [0], [0], [1], [0, 0, 1, 1], [], []>} : vector<2x1xf32>, vector<1x32xf32>, vector<2x32xf32> -> vector<2x32xf32>
    %c136 = arith.constant 136 : index
    %c0_15 = arith.constant 0 : index
    %27 = vector.load %arg4[%c136, %c0_15] : memref<936x128xf32, #tpu.memory_space<vmem>>, vector<1x32xf32>
    %28 = vector.broadcast %27 : vector<1x32xf32> to vector<2x32xf32>
    %29 = arith.addf %26, %28 : vector<2x32xf32>
    %30 = math.tanh %29 : vector<2x32xf32>
    %cst_16 = arith.constant dense<0.000000e+00> : vector<8x32xf32>
    %31 = tpu.matmul %1, %30, %cst_16 {dimension_numbers = #tpu.dot_dimension_numbers<[1], [0], [0], [1], [0, 0, 1, 1], [], []>} : vector<8x2xf32>, vector<2x32xf32>, vector<8x32xf32> -> vector<8x32xf32>
    %c96 = arith.constant 96 : index
    %c0_17 = arith.constant 0 : index
    %32 = vector.load %arg4[%c96, %c0_17] : memref<936x128xf32, #tpu.memory_space<vmem>>, vector<32x96xf32>
    %cst_18 = arith.constant dense<0.000000e+00> : vector<8x96xf32>
    %33 = tpu.matmul %23, %32, %cst_18 {dimension_numbers = #tpu.dot_dimension_numbers<[1], [0], [0], [1], [0, 0, 1, 1], [], []>} : vector<8x32xf32>, vector<32x96xf32>, vector<8x96xf32> -> vector<8x96xf32>
    %c144 = arith.constant 144 : index
    %c0_19 = arith.constant 0 : index
    %34 = vector.load %arg4[%c144, %c0_19] : memref<936x128xf32, #tpu.memory_space<vmem>>, vector<32x96xf32>
    %cst_20 = arith.constant dense<0.000000e+00> : vector<8x96xf32>
    %35 = tpu.matmul %31, %34, %cst_20 {dimension_numbers = #tpu.dot_dimension_numbers<[1], [0], [0], [1], [0, 0, 1, 1], [], []>} : vector<8x32xf32>, vector<32x96xf32>, vector<8x96xf32> -> vector<8x96xf32>
    %36 = arith.addf %33, %35 : vector<8x96xf32>
    %c176 = arith.constant 176 : index
    %c0_21 = arith.constant 0 : index
    %37 = vector.load %arg4[%c176, %c0_21] : memref<936x128xf32, #tpu.memory_space<vmem>>, vector<32x96xf32>
    %cst_22 = arith.constant dense<0.000000e+00> : vector<8x96xf32>
    %38 = tpu.matmul %15, %37, %cst_22 {dimension_numbers = #tpu.dot_dimension_numbers<[1], [0], [0], [1], [0, 0, 1, 1], [], []>} : vector<8x32xf32>, vector<32x96xf32>, vector<8x96xf32> -> vector<8x96xf32>
    %39 = arith.addf %36, %38 : vector<8x96xf32>
    %c208 = arith.constant 208 : index
    %c0_23 = arith.constant 0 : index
    %40 = vector.load %arg4[%c208, %c0_23] : memref<936x128xf32, #tpu.memory_space<vmem>>, vector<1x96xf32>
    %41 = vector.broadcast %40 : vector<1x96xf32> to vector<8x96xf32>
    %42 = arith.addf %39, %41 : vector<8x96xf32>
    %43 = math.tanh %42 : vector<8x96xf32>
    %c216 = arith.constant 216 : index
    %c0_24 = arith.constant 0 : index
    %44 = vector.load %arg4[%c216, %c0_24] : memref<936x128xf32, #tpu.memory_space<vmem>>, vector<64x128xf32>
    %cst_25 = arith.constant dense<0.000000e+00> : vector<8x128xf32>
    %45 = tpu.matmul %21, %44, %cst_25 {dimension_numbers = #tpu.dot_dimension_numbers<[1], [0], [0], [1], [0, 0, 1, 1], [], []>} : vector<8x64xf32>, vector<64x128xf32>, vector<8x128xf32> -> vector<8x128xf32>
    %c280 = arith.constant 280 : index
    %c0_26 = arith.constant 0 : index
    %46 = vector.load %arg4[%c280, %c0_26] : memref<936x128xf32, #tpu.memory_space<vmem>>, vector<96x128xf32>
    %cst_27 = arith.constant dense<0.000000e+00> : vector<8x128xf32>
    %47 = tpu.matmul %43, %46, %cst_27 {dimension_numbers = #tpu.dot_dimension_numbers<[1], [0], [0], [1], [0, 0, 1, 1], [], []>} : vector<8x96xf32>, vector<96x128xf32>, vector<8x128xf32> -> vector<8x128xf32>
    %48 = arith.addf %45, %47 : vector<8x128xf32>
    %49 = vector.extract_strided_slice %48 {offsets = [0, 0], sizes = [8, 64], strides = [1, 1]} : vector<8x128xf32> to vector<8x64xf32>
    %50 = vector.extract_strided_slice %48 {offsets = [0, 64], sizes = [8, 64], strides = [1, 1]} : vector<8x128xf32> to vector<8x64xf32>
    %51 = arith.subf %49, %50 : vector<8x64xf32>
    %c376 = arith.constant 376 : index
    %c0_28 = arith.constant 0 : index
    %52 = vector.load %arg4[%c376, %c0_28] : memref<936x128xf32, #tpu.memory_space<vmem>>, vector<1x64xf32>
    %53 = vector.broadcast %52 : vector<1x64xf32> to vector<8x64xf32>
    %54 = arith.addf %51, %53 : vector<8x64xf32>
    %55 = vector.shape_cast %54 : vector<8x64xf32> to vector<8x1x64xf32>
    %56 = vector.shape_cast %50 : vector<8x64xf32> to vector<1x8x64xf32>
    %57 = vector.broadcast %55 : vector<8x1x64xf32> to vector<8x8x64xf32>
    %58 = vector.broadcast %56 : vector<1x8x64xf32> to vector<8x8x64xf32>
    %59 = arith.addf %57, %58 : vector<8x8x64xf32>
    %60 = math.tanh %59 : vector<8x8x64xf32>
    %61 = vector.shape_cast %60 : vector<8x8x64xf32> to vector<64x64xf32>
    %c384 = arith.constant 384 : index
    %c0_29 = arith.constant 0 : index
    %62 = vector.load %arg4[%c384, %c0_29] : memref<936x128xf32, #tpu.memory_space<vmem>>, vector<64x64xf32>
    %cst_30 = arith.constant dense<0.000000e+00> : vector<64x64xf32>
    %63 = tpu.matmul %61, %62, %cst_30 {dimension_numbers = #tpu.dot_dimension_numbers<[1], [0], [0], [1], [0, 0, 1, 1], [], []>} : vector<64x64xf32>, vector<64x64xf32>, vector<64x64xf32> -> vector<64x64xf32>
    %c448 = arith.constant 448 : index
    %c0_31 = arith.constant 0 : index
    %64 = vector.load %arg4[%c448, %c0_31] : memref<936x128xf32, #tpu.memory_space<vmem>>, vector<1x64xf32>
    %65 = vector.broadcast %64 : vector<1x64xf32> to vector<64x64xf32>
    %66 = arith.addf %63, %65 : vector<64x64xf32>
    %67 = vector.shape_cast %66 : vector<64x64xf32> to vector<8x8x64xf32>
    %68 = vector.shape_cast %2 : vector<8x8xf32> to vector<8x8x1xf32>
    %69 = vector.broadcast %68 : vector<8x8x1xf32> to vector<8x8x64xf32>
    %70 = arith.addf %67, %69 : vector<8x8x64xf32>
    %cst_32 = arith.constant dense<0xFF800000> : vector<8x64xf32>
    %71 = vector.multi_reduction <maximumf>, %70, %cst_32 [1] : vector<8x8x64xf32> to vector<8x64xf32>
    %cst_33 = arith.constant 0.000000e+00 : f32
    %72 = vector.shape_cast %6 : vector<8x1xi1> to vector<8x1xi1>
    %73 = vector.broadcast %72 : vector<8x1xi1> to vector<8x64xi1>
    %74 = vector.broadcast %cst_33 : f32 to vector<8x64xf32>
    %75 = arith.select %73, %71, %74 : vector<8x64xi1>, vector<8x64xf32>
    %76 = math.tanh %75 : vector<8x64xf32>
    %c456 = arith.constant 456 : index
    %c0_34 = arith.constant 0 : index
    %77 = vector.load %arg4[%c456, %c0_34] : memref<936x128xf32, #tpu.memory_space<vmem>>, vector<64x128xf32>
    %cst_35 = arith.constant dense<0.000000e+00> : vector<8x128xf32>
    %78 = tpu.matmul %76, %77, %cst_35 {dimension_numbers = #tpu.dot_dimension_numbers<[1], [0], [0], [1], [0, 0, 1, 1], [], []>} : vector<8x64xf32>, vector<64x128xf32>, vector<8x128xf32> -> vector<8x128xf32>
    %c520 = arith.constant 520 : index
    %c0_36 = arith.constant 0 : index
    %79 = vector.load %arg4[%c520, %c0_36] : memref<936x128xf32, #tpu.memory_space<vmem>>, vector<96x128xf32>
    %cst_37 = arith.constant dense<0.000000e+00> : vector<8x128xf32>
    %80 = tpu.matmul %43, %79, %cst_37 {dimension_numbers = #tpu.dot_dimension_numbers<[1], [0], [0], [1], [0, 0, 1, 1], [], []>} : vector<8x96xf32>, vector<96x128xf32>, vector<8x128xf32> -> vector<8x128xf32>
    %81 = arith.addf %78, %80 : vector<8x128xf32>
    %82 = vector.extract_strided_slice %81 {offsets = [0, 0], sizes = [8, 64], strides = [1, 1]} : vector<8x128xf32> to vector<8x64xf32>
    %83 = vector.extract_strided_slice %81 {offsets = [0, 64], sizes = [8, 64], strides = [1, 1]} : vector<8x128xf32> to vector<8x64xf32>
    %84 = arith.subf %82, %83 : vector<8x64xf32>
    %c616 = arith.constant 616 : index
    %c0_38 = arith.constant 0 : index
    %85 = vector.load %arg4[%c616, %c0_38] : memref<936x128xf32, #tpu.memory_space<vmem>>, vector<1x64xf32>
    %86 = vector.broadcast %85 : vector<1x64xf32> to vector<8x64xf32>
    %87 = arith.addf %84, %86 : vector<8x64xf32>
    %88 = vector.shape_cast %87 : vector<8x64xf32> to vector<8x1x64xf32>
    %89 = vector.shape_cast %83 : vector<8x64xf32> to vector<1x8x64xf32>
    %90 = vector.broadcast %88 : vector<8x1x64xf32> to vector<8x8x64xf32>
    %91 = vector.broadcast %89 : vector<1x8x64xf32> to vector<8x8x64xf32>
    %92 = arith.addf %90, %91 : vector<8x8x64xf32>
    %93 = math.tanh %92 : vector<8x8x64xf32>
    %94 = vector.shape_cast %93 : vector<8x8x64xf32> to vector<64x64xf32>
    %c624 = arith.constant 624 : index
    %c0_39 = arith.constant 0 : index
    %95 = vector.load %arg4[%c624, %c0_39] : memref<936x128xf32, #tpu.memory_space<vmem>>, vector<64x64xf32>
    %cst_40 = arith.constant dense<0.000000e+00> : vector<64x64xf32>
    %96 = tpu.matmul %94, %95, %cst_40 {dimension_numbers = #tpu.dot_dimension_numbers<[1], [0], [0], [1], [0, 0, 1, 1], [], []>} : vector<64x64xf32>, vector<64x64xf32>, vector<64x64xf32> -> vector<64x64xf32>
    %c688 = arith.constant 688 : index
    %c0_41 = arith.constant 0 : index
    %97 = vector.load %arg4[%c688, %c0_41] : memref<936x128xf32, #tpu.memory_space<vmem>>, vector<1x64xf32>
    %98 = vector.broadcast %97 : vector<1x64xf32> to vector<64x64xf32>
    %99 = arith.addf %96, %98 : vector<64x64xf32>
    %100 = vector.shape_cast %99 : vector<64x64xf32> to vector<8x8x64xf32>
    %101 = vector.shape_cast %2 : vector<8x8xf32> to vector<8x8x1xf32>
    %102 = vector.broadcast %101 : vector<8x8x1xf32> to vector<8x8x64xf32>
    %103 = arith.addf %100, %102 : vector<8x8x64xf32>
    %cst_42 = arith.constant dense<0xFF800000> : vector<8x64xf32>
    %104 = vector.multi_reduction <maximumf>, %103, %cst_42 [1] : vector<8x8x64xf32> to vector<8x64xf32>
    %cst_43 = arith.constant 0.000000e+00 : f32
    %105 = vector.shape_cast %6 : vector<8x1xi1> to vector<8x1xi1>
    %106 = vector.broadcast %105 : vector<8x1xi1> to vector<8x64xi1>
    %107 = vector.broadcast %cst_43 : f32 to vector<8x64xf32>
    %108 = arith.select %106, %104, %107 : vector<8x64xi1>, vector<8x64xf32>
    %109 = math.tanh %108 : vector<8x64xf32>
    %c696 = arith.constant 696 : index
    %c0_44 = arith.constant 0 : index
    %110 = vector.load %arg4[%c696, %c0_44] : memref<936x128xf32, #tpu.memory_space<vmem>>, vector<64x64xf32>
    %cst_45 = arith.constant dense<0.000000e+00> : vector<8x64xf32>
    %111 = tpu.matmul %109, %110, %cst_45 {dimension_numbers = #tpu.dot_dimension_numbers<[1], [0], [0], [1], [0, 0, 1, 1], [], []>} : vector<8x64xf32>, vector<64x64xf32>, vector<8x64xf32> -> vector<8x64xf32>
    %c760 = arith.constant 760 : index
    %c0_46 = arith.constant 0 : index
    %112 = vector.load %arg4[%c760, %c0_46] : memref<936x128xf32, #tpu.memory_space<vmem>>, vector<96x64xf32>
    %cst_47 = arith.constant dense<0.000000e+00> : vector<8x64xf32>
    %113 = tpu.matmul %43, %112, %cst_47 {dimension_numbers = #tpu.dot_dimension_numbers<[1], [0], [0], [1], [0, 0, 1, 1], [], []>} : vector<8x96xf32>, vector<96x64xf32>, vector<8x64xf32> -> vector<8x64xf32>
    %114 = arith.addf %111, %113 : vector<8x64xf32>
    %c856 = arith.constant 856 : index
    %c0_48 = arith.constant 0 : index
    %115 = vector.load %arg4[%c856, %c0_48] : memref<936x128xf32, #tpu.memory_space<vmem>>, vector<1x64xf32>
    %116 = vector.broadcast %115 : vector<1x64xf32> to vector<8x64xf32>
    %117 = arith.addf %114, %116 : vector<8x64xf32>
    %118 = math.tanh %117 : vector<8x64xf32>
    %c864 = arith.constant 864 : index
    %c0_49 = arith.constant 0 : index
    %119 = vector.load %arg4[%c864, %c0_49] : memref<936x128xf32, #tpu.memory_space<vmem>>, vector<64x2xf32>
    %cst_50 = arith.constant dense<0.000000e+00> : vector<8x2xf32>
    %120 = tpu.matmul %118, %119, %cst_50 {dimension_numbers = #tpu.dot_dimension_numbers<[1], [0], [0], [1], [0, 0, 1, 1], [], []>} : vector<8x64xf32>, vector<64x2xf32>, vector<8x2xf32> -> vector<8x2xf32>
    %c928 = arith.constant 928 : index
    %c0_51 = arith.constant 0 : index
    %121 = vector.load %arg4[%c928, %c0_51] : memref<936x128xf32, #tpu.memory_space<vmem>>, vector<1x2xf32>
    %122 = vector.broadcast %121 : vector<1x2xf32> to vector<8x2xf32>
    %123 = arith.addf %120, %122 : vector<8x2xf32>
    %c0_52 = arith.constant 0 : index
    %c0_53 = arith.constant 0 : index
    %124 = vector.load %arg5[%c0_52, %c0_53] : memref<8x2xf32, #tpu.memory_space<vmem>>, vector<8x2xf32>
    tpu.vector_store %arg5[%c0_52, %c0_53], %123 {strides = array<i32>} : memref<8x2xf32, #tpu.memory_space<vmem>>, vector<8x2xf32>,
    return
  }
  func.func @transform_0(%arg0: i32) -> (i32, i32) {
    %c0_i32 = arith.constant 0 : i32
    %c0_i32_0 = arith.constant 0 : i32
    %c0_i32_1 = arith.constant 0 : i32
    return %c0_i32, %c0_i32_0 : i32, i32
  }
  func.func @transform_1(%arg0: i32) -> (i32, i32) {
    %c0_i32 = arith.constant 0 : i32
    %c0_i32_0 = arith.constant 0 : i32
    %c0_i32_1 = arith.constant 0 : i32
    return %c0_i32, %c0_i32_0 : i32, i32
  }
  func.func @transform_2(%arg0: i32) -> (i32, i32) {
    %c0_i32 = arith.constant 0 : i32
    %c0_i32_0 = arith.constant 0 : i32
    %c0_i32_1 = arith.constant 0 : i32
    return %c0_i32, %c0_i32_0 : i32, i32
  }
  func.func @transform_3(%arg0: i32) -> (i32, i32) {
    %c0_i32 = arith.constant 0 : i32
    %c0_i32_0 = arith.constant 0 : i32
    %c0_i32_1 = arith.constant 0 : i32
    return %c0_i32, %c0_i32_0 : i32, i32
  }
  func.func @transform_4(%arg0: i32) -> (i32, i32) {
    %c0_i32 = arith.constant 0 : i32
    %c0_i32_0 = arith.constant 0 : i32
    %c0_i32_1 = arith.constant 0 : i32
    return %c0_i32, %c0_i32_0 : i32, i32
  }
}

</mosaic_0001>

<bundles_post_ra>
// kernel: tpu_custom_call.1
= control target key start
LH: loop header
LB: loop body
LE: loop exit
PB: predicated region body
PF: predicated region fallthrough
CT: control target
= control target key end

     0   :  { %9 = vsyncpa [#allocation3], 0  ;;  %s3024_s0 = inlined_call_operand.hbm [shape: f32[8,22], index: 0, kind: input, shape index: {}]   ;;  %s3025_s1 = inlined_call_operand.vmem [shape: f32[2,1], index: 1, kind: input, shape index: {}]   ;;  %s3026_s2 = inlined_call_operand.vmem [shape: f32[8,32], index: 2, kind: input, shape index: {}]   ;;  %s3027_s3 = inlined_call_operand.hbm [shape: f32[936,128], index: 3, kind: input, shape index: {}]   ;;  %s3028_s4 = inlined_call_operand.vmem [shape: f32[8,2], index: 4, kind: output, shape index: {}]  }
   0x1   :  { %10 = vsyncpa [#allocation5], 0  ;;  %s2721_s15 = smov [#allocation2]   ;;  %s2722_s17 = smov [#allocation4]  }
   0x2   :  { %s17_s16 = sshll.u32 %s2721_s15, 4  ;;  %s30_s18 = sshll.u32 %s2722_s17, 4  ;;  %s18_s16 = int_to_ptr.vmem [resolvable:$true] %s17_s16  ;;  %s2757_s18 = int_to_ptr.vmem [resolvable:$true] %s30_s18 }
   0x3   :  { %s2673_s21 = scalar_lea.hbm %s3024_s0, 128 }
   0x4   :  { %p2674_p0 = scmp.ne.s32.totalorder %s3024_s0, %s2673_s21  ;;  %p2677_p1 = scmp.lt.u32.totalorder %s2673_s21, %s3024_s0 }
   0x6   :  { %p2679_p2 = pnand %p2677_p1, %p2674_p0 }
   0x8   :  { %2682 = shalt.err (!%p2679_p2)
}
   0x9   :  { %s2683_s26 = scalar_lea.vmem %s18_s16, 128  ;;  %p2688_p4 = scmp.lt.s32.totalorder %s18_s16, %s18_s16 }
   0xa   :  { %p2684_p3 = scmp.ne.s32.totalorder %s18_s16, %s2683_s26  ;;  %p2689_p5 = scmp.lt.s32.totalorder %s2683_s26, %s2683_s26 }
   0xc   :  { %p2690_p6 = por %p2689_p5, %p2688_p4 }
   0xe   :  { %p2691_p7 = pnand %p2690_p6, %p2684_p3 }
  0x10   :  { %2694 = shalt.err (!%p2691_p7)
}
  0x11   :  { %20 = dma.hbm_to_vmem [thread:$0]  %s3024_s0, 128, %s18_s16, [#allocation3]  }
  0x12   :  { %s2695_s5 = scalar_lea.hbm %s3027_s3, 14976 }
  0x13   :  { %p2696_p8 = scmp.ne.s32.totalorder %s3027_s3, %s2695_s5  ;;  %p2699_p9 = scmp.lt.u32.totalorder %s2695_s5, %s3027_s3 }
  0x15   :  { %p2701_p10 = pnand %p2699_p9, %p2696_p8 }
  0x17   :  { %2704 = shalt.err (!%p2701_p10)
}
  0x18   :  { %s2705_s10 = scalar_lea.vmem %s2757_s18, 14976  ;;  %p2710_p12 = scmp.lt.s32.totalorder %s2757_s18, %s2757_s18 }
  0x19   :  { %p2706_p11 = scmp.ne.s32.totalorder %s2757_s18, %s2705_s10  ;;  %p2711_p13 = scmp.lt.s32.totalorder %s2705_s10, %s2705_s10 }
  0x1b   :  { %p2712_p0 = por %p2711_p13, %p2710_p12 }
  0x1d   :  { %p2713_p1 = pnand %p2712_p0, %p2706_p11 }
  0x1f   :  { %2716 = shalt.err (!%p2713_p1)
}
  0x20   :  { %s2723_s0 = smov 128   ;;  %s2724_s11 = smov 8  }
  0x21   :  { %36 = dma.hbm_to_vmem [thread:$0]  %s3027_s3, 14976, %s2757_s18, [#allocation5], %s2723_s0, %s2723_s0, %s2724_s11  }
  0x22   :  { %2717 = dma.done.wait [#allocation3], 128  }
  0x23   :  { %2718 = vsyncadd [#allocation3], 4294967168 }
  0x24   :  { %2719 = dma.done.wait [#allocation5], 14976  }
  0x25   :  { %2720 = vsyncadd [#allocation5], 4294952320  ;;  %v2725_v0 = vmov 0.0   ;;  %vm2726_vm0 = vmmov 0   ;;  %v2727_v1 = vmov 0.0|0.0   ;;  %vm236_vm1 = vcmask 1040384  }
  0x26   :  { %2186 = vmatprep.subr.mxu0 %v2725_v0  ;;  %2188 = vmatprep.mubr.msk.f32.mxu0 %vm2726_vm0, %v2725_v0  ;;  %vm60_vm2 = vcmask 1043456   ;;  %vm232_vm3 = vcmask 7168   ;;  %v226_v2 = vld [vmem:[#allocation4 + $0x80] sm:$0x1]  ;;  %v225_v3 = vld [vmem:[%s3025_s1] sm:$0x3] }
  0x27   :  { %2442 = vmatprep.subr.bf16.mxu1 %v2727_v1  ;;  %2164 = vmatprep.mubr.msk.f32.mxu1 %vm2726_vm0, %v2725_v0  ;;  %v49_v4 = vld [vmem:[#allocation4] sm:$0xff]  ;;  %v50_v5 = vld [vmem:[#allocation4 + $0x8] sm:$0xf]  ;;  %vm2728_vm4 = vmmov 1   ;;  %v2797_v6 = vld [vmem:[#allocation2] sm:$0xff]  ;;  %s2729_s15 = smov 116  }
  0x28   :  { %2187 = vmatpush3.msk.msra.mxu0 %vm236_vm1, %v226_v2  ;;  %vm2444_vm5 = vmpackc.low %vm60_vm2, %vm2728_vm4  ;;  %v2443_v7 = vpack.c.bf16 %v50_v5, %v49_v4  ;;  %311 = vrot.lane.b32.xlu0 %v2797_v6, %s2729_s15  ;;  %vm56_vm6 = vcmask 97280   ;;  %v135_v8 = vld [vmem:[#allocation4 + $0x18] sm:$0xff]  ;;  %v136_v9 = vld [vmem:[#allocation4 + $0x20] sm:$0xff]  ;;  %vm316_vm7 = vcmask 1041408   ;;  %vm313_vm8 = vcmask 15360   ;;  %s2730_s1 = smov 64  }
  0x29   :  { %2189 = vmatmul.mubr.msk.f32.vlgmr.msra.gmra.mrb[0].mxu0 %vm232_vm3, %v225_v3  ;;  %2191 = vmatprep.subr.mxu0 %v2725_v0  ;;  %v2447_v10 = vpack.c.bf16 %v136_v9, %v135_v8  ;;  %v137_v11 = vld [vmem:[#allocation4 + $0x28] sm:$0xff]  ;;  %v138_v12 = vld [vmem:[#allocation4 + $0x30] sm:$0xff]  ;;  %v139_v14 = vld [vmem:[#allocation4 + $0x38] sm:$0xff]  ;;  %vm148_vm9 = vcmask 523264   ;;  %vm398_vm10 = vcmask 261120   ;;  %vm651_vm11 = vcmask 785408  }
  0x2a   :  { %2193 = vmatprep.mubr.msk.f32.mxu0 %vm2726_vm0, %v2725_v0  ;;  %2445 = vmatpush3.bf16.msk.msra.mxu1 %vm2444_vm5, %v2443_v7  ;;  %v2450_v13 = vpack.c.bf16 %v138_v12, %v137_v11  ;;  %v140_v15 = vld [vmem:[#allocation4 + $0x40] sm:$0xff]  ;;  %v141_v17 = vld [vmem:[#allocation4 + $0x48] sm:$0xff]  ;;  %v142_v18 = vld [vmem:[#allocation4 + $0x50] sm:$0xff]  ;;  %vm44_vm12 = vcmask 179312   ;;  %vm1195_vm13 = vcmask 1041409   ;;  %vm1197_vm14 = vcmask 1042434  }
  0x2b   :  { %2446 = vmatprep.subr.bf16.mxu1 %v2727_v1  ;;  %v2453_v16 = vpack.c.bf16 %v140_v15, %v139_v14  ;;  %v2456_v19 = vpack.c.bf16 %v142_v18, %v141_v17  ;;  %v1984_v20 = vld [vmem:[#allocation4 + $0x88] ss:$0 sm:$0xff]  ;;  %v1979_v24 = vld [vmem:[#allocation4 + $0x10] ss:$0 sm:$0xff]  ;;  %v395_v29 = vld [vmem:[#allocation4 + $0x98] sm:$0xff]  ;;  %vm1199_vm15 = vcmask 1043459  }
  0x2c   :  { %v394_v28 = vld [vmem:[#allocation4 + $0x90] sm:$0xff]  ;;  %v396_v32 = vld [vmem:[#allocation4 + $0xa0] sm:$0xff]  ;;  %v397_v34 = vld [vmem:[#allocation4 + $0xa8] sm:$0xff]  ;;  %vm1201_vm1 = vcmask 1044484   ;;  %vm1203_vm2 = vcmask 1045509   ;;  %vm1205_vm3 = vcmask 1046534  }
  0x2d   :  { %2165 = vmatmul.mubr.msk.f32.vlgmr.msra.gmra.mrb[0].mxu1 %vm56_vm6, %v2797_v6  ;;  %v2459_v31 = vpack.c.bf16 %v395_v29, %v394_v28  ;;  %v390_v35 = vld [vmem:[#allocation4 + $0x60] sm:$0xff]  ;;  %v391_v36 = vld [vmem:[#allocation4 + $0x68] sm:$0xff]  ;;  %v2462_v37 = vpack.c.bf16 %v397_v34, %v396_v32  ;;  %v223_v40 = vld [vmem:[%s3026_s2] sm:$0xff]  ;;  %vm1207_vm4 = vcmask 1047559  }
  0x2e   :  { %2183 = vmatprep.mubr.msk.f32.mxu1 %vm2726_vm0, %v2725_v0  ;;  %2448 = vmatpush3.bf16.msra.mxu1 %v2447_v10  ;;  %v2465_v38 = vpack.c.bf16 %v391_v36, %v390_v35  ;;  %v392_v41 = vld [vmem:[#allocation4 + $0x70] sm:$0xff]  ;;  %v393_v42 = vld [vmem:[#allocation4 + $0x78] sm:$0xff]  ;;  %v640_v46 = vld [vmem:[#allocation4 + $0x120] sm:$0xff] }
  0x2f   :  { %2449 = vmatprep.subr.bf16.mxu1 %v2727_v1  ;;  %v2468_v43 = vpack.c.bf16 %v393_v42, %v392_v41  ;;  %v639_v45 = vld [vmem:[#allocation4 + $0x118] sm:$0xff]  ;;  %v545_v48 = vld [vmem:[#allocation4 + $0xb0] sm:$0xff]  ;;  %v547_v51 = vld [vmem:[#allocation4 + $0xc0] sm:$0xff] }
  0x30   :  { %v2477_v47 = vpack.c.bf16 %v640_v46, %v639_v45  ;;  %v546_v49 = vld [vmem:[#allocation4 + $0xb8] sm:$0xff]  ;;  %v548_v52 = vld [vmem:[#allocation4 + $0xc8] sm:$0xff]  ;;  %v642_v61 = vld [vmem:[#allocation4 + $0x130] sm:$0xff] }
  0x31   :  { %v2471_v50 = vpack.c.bf16 %v546_v49, %v545_v48  ;;  %v2474_v55 = vpack.c.bf16 %v548_v52, %v547_v51  ;;  %v641_v60 = vld [vmem:[#allocation4 + $0x128] sm:$0xff]  ;;  %v643_v2 = vld [vmem:[#allocation4 + $0x138] sm:$0xff]  ;;  %v644_v3 = vld [vmem:[#allocation4 + $0x140] sm:$0xff] }
  0x32   :  { %2451 = vmatpush3.bf16.msra.mxu1 %v2450_v13  ;;  %v2480_v62 = vpack.c.bf16 %v642_v61, %v641_v60  ;;  %v2483_v4 = vpack.c.bf16 %v644_v3, %v643_v2  ;;  %v645_v5 = vld [vmem:[#allocation4 + $0x148] sm:$0xff]  ;;  %v646_v7 = vld [vmem:[#allocation4 + $0x150] sm:$0xff]  ;;  %v647_v9 = vld [vmem:[#allocation4 + $0x158] sm:$0xff] }
  0x33   :  { %2452 = vmatprep.subr.bf16.mxu1 %v2727_v1  ;;  %v2486_v8 = vpack.c.bf16 %v646_v7, %v645_v5  ;;  %v648_v10 = vld [vmem:[#allocation4 + $0x160] sm:$0xff]  ;;  %v649_v11 = vld [vmem:[#allocation4 + $0x168] sm:$0xff]  ;;  %v650_v13 = vld [vmem:[#allocation4 + $0x170] sm:$0xff] }
  0x34   :  { %v2489_v12 = vpack.c.bf16 %v648_v10, %v647_v9  ;;  %v2492_v14 = vpack.c.bf16 %v650_v13, %v649_v11  ;;  %v634_v28 = vld [vmem:[#allocation4 + $0xf0] sm:$0xff]  ;;  %v635_v32 = vld [vmem:[#allocation4 + $0xf8] sm:$0xff]  ;;  %v637_v35 = vld [vmem:[#allocation4 + $0x108] sm:$0xff]  ;;  %v45_v10 = vsel %vm44_vm12, %v2797_v6, -inf  ;;  %v2731_v11 = vmov 1966171168  }
  0x35   :  { %v638_v36 = vld [vmem:[#allocation4 + $0x110] sm:$0xff]  ;;  %v918_v45 = vld [vmem:[#allocation4 + $0x198] sm:$0xff]  ;;  %v920_v48 = vld [vmem:[#allocation4 + $0x1a8] sm:$0xff] }
  0x36   :  { %2454 = vmatpush3.bf16.msra.mxu1 %v2453_v16  ;;  %v922_v51 = vld [vmem:[#allocation4 + $0x1b8] sm:$0xff] }
  0x37   :  { %2455 = vmatprep.subr.bf16.mxu1 %v2727_v1 }
  0x3a   :  { %2457 = vmatpush3.bf16.msra.mxu1 %v2456_v19  ;;  %v1992_v19 = vld [vmem:[#allocation4 + $0xd0] ss:$0 sm:$0xff] }
  0x3b   :  { %2464 = vmatprep.subr.bf16.mxu1 %v2727_v1 }
  0x9a   :  { %v312_v30 = vpop.permute.xlu0 %311 }
  0xfc   :  { %v306_v21 = vpop.f32.mrb[0].mxu0 }
  0xfd   :  { %v307_v22 = vadd.f32 %v1984_v20, %v306_v21  ;;  %v2190_v23 = vpop.f32.mrb[1].mxu0 }
  0xfe   :  { %v631_v23 = vld [vmem:[#allocation4 + $0xd8] sm:$0xff] }
  0xff   :  { %2625 = vtanh.f32 %v307_v22 }
 0x100   :  { %v130_v25 = vpop.f32.mrb[0].mxu1 }
 0x101   :  { %v131_v26 = vadd.f32 %v1979_v24, %v130_v25  ;;  %v2166_v27 = vpop.f32.mrb[1].mxu1  ;;  %v632_v24 = vld [vmem:[#allocation4 + $0xe0] sm:$0xff] }
 0x102   :  { %v2495_v25 = vpack.c.bf16 %v632_v24, %v631_v23  ;;  %v633_v27 = vld [vmem:[#allocation4 + $0xe8] sm:$0xff] }
 0x103   :  { %2627 = vtanh.f32 %v131_v26  ;;  %v1982_v26 = vld [vmem:[#allocation4 + $0x58] ss:$0 sm:$0xff] }
 0x104   :  { %2629 = vtanh.f32 %v223_v40  ;;  %v916_v40 = vld [vmem:[#allocation4 + $0x188] sm:$0xff] }
 0x109   :  { %v2626_v33 = vpop.eup %2625 }
 0x10a   :  { %2192 = vmatpush3.msk.msra.mxu0 %vm316_vm7, %v2626_v33  ;;  %v636_v33 = vld [vmem:[#allocation4 + $0x100] sm:$0xff] }
 0x10b   :  { %2194 = vmatmul.mubr.msk.f32.vlgmr.msra.gmra.mrb[2].mxu0 %vm313_vm8, %v312_v30  ;;  %2458 = vmatprep.subr.bf16.mxu0 %v2727_v1  ;;  %v2501_v34 = vpack.c.bf16 %v636_v33, %v635_v32 }
 0x10c   :  { %2460 = vmatpush3.bf16.msra.mxu0 %v2459_v31  ;;  %2204 = vmatprep.mubr.msk.f32.mxu0 %vm2726_vm0, %v2725_v0  ;;  %v2498_v31 = vpack.c.bf16 %v634_v28, %v633_v27 }
 0x10d   :  { %2461 = vmatprep.subr.bf16.mxu0 %v2727_v1  ;;  %v2628_v39 = vpop.eup %2627 }
 0x10e   :  { %549 = vrot.lane.b32.xlu0 %v2628_v39, %s2730_s1  ;;  %2184 = vmatmul.mubr.msk.f32.vlgmr.msra.gmra.mrb[2].mxu1 %vm148_vm9, %v2628_v39  ;;  %v2630_v44 = vpop.eup %2629  ;;  %v915_v39 = vld [vmem:[#allocation4 + $0x180] sm:$0xff] }
 0x10f   :  { %2466 = vmatpush3.bf16.msra.mxu1 %v2465_v38  ;;  %2215 = vmatprep.mubr.msk.f32.mxu1 %vm2726_vm0, %v2725_v0  ;;  %v2506_v41 = vpack.c.bf16 %v916_v40, %v915_v39 }
 0x110   :  { %2463 = vmatpush3.bf16.msra.mxu0 %v2462_v37  ;;  %2467 = vmatprep.subr.bf16.mxu1 %v2727_v1  ;;  %v2504_v37 = vpack.c.bf16 %v638_v36, %v637_v35 }
 0x111   :  { %2470 = vmatprep.subr.bf16.mxu0 %v2727_v1 }
 0x113   :  { %2469 = vmatpush3.bf16.msra.mxu1 %v2468_v43 }
 0x114   :  { %2476 = vmatprep.subr.bf16.mxu1 %v2727_v1 }
 0x116   :  { %2216 = vmatmul.mubr.msk.f32.vlgmr.msra.gmra.mrb[4].mxu1 %vm398_vm10, %v2630_v44  ;;  %v917_v44 = vld [vmem:[#allocation4 + $0x190] sm:$0xff] }
 0x117   :  { %2253 = vmatprep.mubr.msk.f32.mxu1 %vm2726_vm0, %v2725_v0  ;;  %2478 = vmatpush3.bf16.msra.mxu1 %v2477_v47  ;;  %v2510_v46 = vpack.c.bf16 %v918_v45, %v917_v44  ;;  %v919_v47 = vld [vmem:[#allocation4 + $0x1a0] sm:$0xff] }
 0x118   :  { %2479 = vmatprep.subr.bf16.mxu1 %v2727_v1  ;;  %v2514_v49 = vpack.c.bf16 %v920_v48, %v919_v47  ;;  %v1220_v47 = vld [vmem:[#allocation4 + $0x208] sm:$0xff]  ;;  %v1221_v48 = vld [vmem:[#allocation4 + $0x210] sm:$0xff] }
 0x11b   :  { %2481 = vmatpush3.bf16.msra.mxu1 %v2480_v62 }
 0x11c   :  { %2482 = vmatprep.subr.bf16.mxu1 %v2727_v1 }
 0x11f   :  { %2484 = vmatpush3.bf16.msra.mxu1 %v2483_v4 }
 0x120   :  { %2485 = vmatprep.subr.bf16.mxu1 %v2727_v1 }
 0x123   :  { %2487 = vmatpush3.bf16.msra.mxu1 %v2486_v8 }
 0x124   :  { %2488 = vmatprep.subr.bf16.mxu1 %v2727_v1 }
 0x127   :  { %2490 = vmatpush3.bf16.msra.mxu1 %v2489_v12  ;;  %v812_v12 = vunpack.c.l.s4 %v2731_v11  ;;  %v1230_v11 = vld [vmem:[#allocation4 + $0x258] sm:$0xff] }
 0x128   :  { %2491 = vmatprep.subr.bf16.mxu1 %v2727_v1 }
 0x129   :  { %v813_v13 = vunpack.c.0.s8 %v812_v12  ;;  %v1231_v12 = vld [vmem:[#allocation4 + $0x260] sm:$0xff] }
 0x12b   :  { %2493 = vmatpush3.bf16.msra.mxu1 %v2492_v14  ;;  %v1995_v14 = vld [vmem:[#allocation4 + $0x178] ss:$0 sm:$0xff] }
 0x12c   :  { %2494 = vmatprep.subr.bf16.mxu1 %v2727_v1 }
 0x180   :  { %v550_v58 = vpop.permute.xlu0 %549 }
 0x1de   :  { %v386_v53 = vpop.f32.mrb[2].mxu0 }
 0x1df   :  { %2205 = vmatmul.mubr.msk.f32.vlgmr.msra.gmra.mrb[4].mxu0 %vm398_vm10, %v386_v53  ;;  %v2195_v54 = vpop.f32.mrb[3].mxu0  ;;  %v814_v53 = vlaneseq }
 0x1e0   :  { %2472 = vmatpush3.bf16.msra.mxu0 %v2471_v50  ;;  %2226 = vmatprep.mubr.msk.f32.mxu0 %vm2726_vm0, %v2725_v0  ;;  %v921_v50 = vld [vmem:[#allocation4 + $0x1b0] sm:$0xff] }
 0x1e1   :  { %2473 = vmatprep.subr.bf16.mxu0 %v2727_v1  ;;  %v218_v56 = vpop.f32.mrb[2].mxu1  ;;  %v2518_v52 = vpack.c.bf16 %v922_v51, %v921_v50  ;;  %v815_v54 = vshrl.u32 %v814_v53, 7  ;;  %v2523_v51 = vpack.c.bf16 %v1221_v48, %v1220_v47  ;;  %v1223_v53 = vld [vmem:[#allocation4 + $0x220] sm:$0xff] }
 0x1e2   :  { %v2185_v57 = vpop.f32.mrb[3].mxu1  ;;  %v219_v30 = vadd.f32 %v1982_v26, %v218_v56 }
 0x1e3   :  { %v1075_v57 = vsub.s32 2, %v815_v54  ;;  %v1091_v61 = vsub.s32 4, %v815_v54  ;;  %v1099_v2 = vsub.s32 5, %v815_v54  ;;  %v1107_v4 = vsub.s32 6, %v815_v54 }
 0x1e4   :  { %2475 = vmatpush3.bf16.msra.mxu0 %v2474_v55  ;;  %v2852_v55 = vsub.s32 0, %v815_v54  ;;  %v1115_v7 = vsub.s32 7, %v815_v54 }
 0x1e5   :  { %2507 = vmatprep.subr.bf16.mxu0 %v2506_v41  ;;  %v1076_v60 = vrot.slane %v2797_v6, %v1075_v57  ;;  %v1092_v3 = vrot.slane %v2797_v6, %v1091_v61  ;;  %v1100_v5 = vrot.slane %v2797_v6, %v1099_v2  ;;  %v1108_v8 = vrot.slane %v2797_v6, %v1107_v4  ;;  %v1227_v2 = vld [vmem:[#allocation4 + $0x240] sm:$0xff] }
 0x1e6   :  { %v1060_v56 = vrot.slane %v2797_v6, %v2852_v55  ;;  %v1116_v9 = vrot.slane %v2797_v6, %v1115_v7  ;;  %v1228_v7 = vld [vmem:[#allocation4 + $0x248] sm:$0xff] }
 0x1e7   :  { %2227 = vmatmul.mubr.msk.f32.vlgmr.msra.gmra.mrb[6].mxu0 %vm398_vm10, %v550_v58  ;;  %v1067_v58 = vsub.s32 1, %v815_v54 }
 0x1e8   :  { %2509 = vmatpush3.bf16.msra.mxu0 %v2506_v41 }
 0x1e9   :  { %v541_v59 = vpop.f32.mrb[4].mxu1  ;;  %2511 = vmatprep.subr.bf16.mxu0 %v2510_v46  ;;  %v1068_v62 = vrot.slane %v2797_v6, %v1067_v58  ;;  %v1224_v58 = vld [vmem:[#allocation4 + $0x228] sm:$0xff] }
 0x1ea   :  { %v2217_v63 = vpop.f32.mrb[5].mxu1 }
 0x1eb   :  { %1071 = vbcast.lane.b32.xlu0 %v1068_v62, 270 }
 0x1ec   :  { %2513 = vmatpush3.bf16.msra.mxu0 %v2510_v46 }
 0x1ed   :  { %2515 = vmatprep.subr.bf16.mxu0 %v2514_v49 }
 0x1f0   :  { %2517 = vmatpush3.bf16.msra.mxu0 %v2514_v49 }
 0x1f1   :  { %2519 = vmatprep.subr.bf16.mxu0 %v2518_v52 }
 0x1f4   :  { %2521 = vmatpush3.bf16.msra.mxu0 %v2518_v52  ;;  %v1222_v52 = vld [vmem:[#allocation4 + $0x218] sm:$0xff] }
 0x1f5   :  { %2522 = vmatprep.subr.bf16.mxu0 %v2727_v1  ;;  %v2526_v57 = vpack.c.bf16 %v1223_v53, %v1222_v52 }
 0x2b2   :  { %v468_v15 = vpop.f32.mrb[4].mxu0 }
 0x2b3   :  { %v2206_v16 = vpop.f32.mrb[5].mxu0  ;;  %v542_v17 = vadd.f32 %v541_v59, %v468_v15  ;;  %v1083_v59 = vsub.s32 3, %v815_v54 }
 0x2b4   :  { %v2864_v16 = vsub.s32 %v813_v13, %v815_v54  ;;  %v2538_v13 = vpack.c.bf16 %v1231_v12, %v1230_v11 }
 0x2b5   :  { %v1084_v63 = vrot.slane %v2797_v6, %v1083_v59  ;;  %v1225_v59 = vld [vmem:[#allocation4 + $0x230] sm:$0xff] }
 0x2b6   :  { %v2529_v62 = vpack.c.bf16 %v1225_v59, %v1224_v58 }
 0x2b7   :  { %1087 = vbcast.lane.b32.xlu0 %v1084_v63, 270  ;;  %v1226_v63 = vld [vmem:[#allocation4 + $0x238] sm:$0xff] }
 0x2ba   :  { %v619_v18 = vpop.f32.mrb[6].mxu0 }
 0x2bb   :  { %v623_v20 = vadd.f32 %v619_v18, %v542_v17  ;;  %v2228_v21 = vpop.f32.mrb[7].mxu0  ;;  %1103 = vbcast.lane.b32.xlu0 %v1100_v5, 270  ;;  %v2532_v5 = vpack.c.bf16 %v1227_v2, %v1226_v63 }
 0x2bd   :  { %v629_v22 = vadd.f32 %v1992_v19, %v623_v20 }
 0x2bf   :  { %2631 = vtanh.f32 %v629_v22  ;;  %1119 = vbcast.lane.b32.xlu0 %v1116_v9, 270 }
 0x2c0   :  { %2633 = vtanh.f32 %v219_v30 }
 0x2c9   :  { %v2840_v29 = vpop.eup %2631 }
 0x2ca   :  { %2254 = vmatmul.mubr.msk.f32.vlgmr.msra.gmra.mrb[6].mxu1 %vm651_vm11, %v2840_v29  ;;  %v2634_v38 = vpop.eup %2633 }
 0x2cb   :  { %2496 = vmatpush3.bf16.msra.mxu1 %v2495_v25  ;;  %2272 = vmatprep.mubr.msk.f32.mxu1 %vm2726_vm0, %v2725_v0 }
 0x2cc   :  { %2497 = vmatprep.subr.bf16.mxu1 %v2727_v1 }
 0x2cf   :  { %2499 = vmatpush3.bf16.msra.mxu1 %v2498_v31 }
 0x2d0   :  { %2500 = vmatprep.subr.bf16.mxu1 %v2727_v1 }
 0x2d3   :  { %2502 = vmatpush3.bf16.msra.mxu1 %v2501_v34 }
 0x2d4   :  { %2503 = vmatprep.subr.bf16.mxu1 %v2727_v1 }
 0x2d7   :  { %2505 = vmatpush3.bf16.msra.mxu1 %v2504_v37 }
 0x2da   :  { %2273 = vmatmul.mubr.msk.f32.vlgmr.msra.gmra.mrb[6].mxu1 %vm148_vm9, %v2634_v38 }
 0x3ad   :  { %v794_v42 = vpop.f32.mrb[6].mxu1 }
 0x3ae   :  { %799 = vrot.lane.b32.xlu1 %v794_v42, %s2730_s1  ;;  %v2274_v43 = vpop.f32.mrb[7].mxu1 }
 0x3b2   :  { %1063 = vbcast.lane.b32.xlu1 %v1060_v56, 270 }
 0x3b6   :  { %1079 = vbcast.lane.b32.xlu1 %v1076_v60, 270 }
 0x3ba   :  { %1095 = vbcast.lane.b32.xlu1 %v1092_v3, 270 }
 0x3be   :  { %1111 = vbcast.lane.b32.xlu1 %v1108_v8, 270  ;;  %v1229_v8 = vld [vmem:[#allocation4 + $0x250] sm:$0xff] }
 0x3e2   :  { %46 = vmax.xlane.f32.xlu1 %v45_v10  ;;  %v2535_v10 = vpack.c.bf16 %v1229_v8, %v1228_v7 }
 0x420   :  { %v800_v15 = vpop.permute.xlu1 %799 }
 0x421   :  { %v802_v17 = vsub.f32 %v794_v42, %v800_v15 }
 0x423   :  { %v808_v18 = vadd.f32 %v1995_v14, %v802_v17  ;;  %v1212_v14 = vld [vmem:[#allocation4 + $0x1c8] sm:$0xff] }
 0x425   :  { %v810_v19 = vcombine.high %v808_v18, %v808_v18  ;;  %v817_v20 = vrot.slane %v808_v18, %v2864_v16  ;;  %v1214_v18 = vld [vmem:[#allocation4 + $0x1d8] sm:$0xff] }
 0x427   :  { %v824_v21 = vrot.slane %v810_v19, %v2864_v16  ;;  %v825_v22 = vcombine.high %v817_v20, %v817_v20  ;;  %v833_v23 = vrot.slane %v817_v20, %v2864_v16  ;;  %v1215_v19 = vld [vmem:[#allocation4 + $0x1e0] sm:$0xff] }
 0x428   :  { %v2544_v20 = vpack.c.bf16 %v1215_v19, %v1214_v18 }
 0x429   :  { %v826_v24 = vcombine.high %v824_v21, %v824_v21  ;;  %v840_v6 = vrot.slane %v824_v21, %v2864_v16  ;;  %v847_v25 = vrot.slane %v825_v22, %v2864_v16  ;;  %v855_v26 = vcombine.high %v833_v23, %v833_v23  ;;  %v1216_v21 = vld [vmem:[#allocation4 + $0x1e8] sm:$0xff]  ;;  %v1217_v22 = vld [vmem:[#allocation4 + $0x1f0] sm:$0xff] }
 0x42a   :  { %v862_v27 = vrot.slane %v833_v23, %v2852_v55  ;;  %v2547_v23 = vpack.c.bf16 %v1217_v22, %v1216_v21 }
 0x42b   :  { %v857_v28 = vcombine.high %v847_v25, %v847_v25  ;;  %v866_v30 = vrot.slane %v847_v25, %v2852_v55  ;;  %v854_v31 = vrot.slane %v826_v24, %v2864_v16  ;;  %v870_v32 = vrot.slane %v855_v26, %v2852_v55  ;;  %v1218_v24 = vld [vmem:[#allocation4 + $0x1f8] sm:$0xff]  ;;  %v2904_v26 = vpop.permute.xlu0 %1071 }
 0x42c   :  { %v899_v33 = vadd.f32 %v862_v27, %v800_v15  ;;  %v856_v34 = vcombine.high %v840_v6, %v840_v6  ;;  %v878_v36 = vrot.slane %v840_v6, %v2852_v55  ;;  %v1219_v6 = vld [vmem:[#allocation4 + $0x200] sm:$0xff]  ;;  %v2906_v27 = vpop.permute.xlu1 %1063 }
 0x42d   :  { %v874_v35 = vrot.slane %v857_v28, %v2852_v55  ;;  %v900_v37 = vadd.f32 %v866_v30, %v800_v15  ;;  %v901_v38 = vadd.f32 %v870_v32, %v800_v15  ;;  %v858_v39 = vcombine.high %v854_v31, %v854_v31  ;;  %v1996_v28 = vld [vmem:[#allocation4 + $0x1c0] ss:$0 sm:$0xff] }
 0x42e   :  { %2635 = vtanh.f32 %v899_v33  ;;  %v882_v40 = vrot.slane %v854_v31, %v2852_v55  ;;  %v886_v42 = vrot.slane %v856_v34, %v2852_v55  ;;  %v903_v43 = vadd.f32 %v878_v36, %v800_v15 }
 0x42f   :  { %v902_v41 = vadd.f32 %v874_v35, %v800_v15  ;;  %2637 = vtanh.f32 %v900_v37  ;;  %v890_v44 = vrot.slane %v858_v39, %v2852_v55  ;;  %v2550_v25 = vpack.c.bf16 %v1219_v6, %v1218_v24  ;;  %v2908_v33 = vpop.permute.xlu0 %1087 }
 0x430   :  { %2639 = vtanh.f32 %v901_v38  ;;  %v904_v45 = vadd.f32 %v882_v40, %v800_v15  ;;  %v905_v46 = vadd.f32 %v886_v42, %v800_v15  ;;  %v2911_v36 = vpop.permute.xlu1 %1079 }
 0x431   :  { %2641 = vtanh.f32 %v902_v41  ;;  %v906_v50 = vadd.f32 %v890_v44, %v800_v15  ;;  %v1213_v15 = vld [vmem:[#allocation4 + $0x1d0] sm:$0xff] }
 0x432   :  { %2643 = vtanh.f32 %v903_v43  ;;  %v2541_v17 = vpack.c.bf16 %v1213_v15, %v1212_v14 }
 0x433   :  { %2645 = vtanh.f32 %v904_v45  ;;  %v2917_v47 = vpop.permute.xlu0 %1103 }
 0x434   :  { %2647 = vtanh.f32 %v905_v46 }
 0x435   :  { %2649 = vtanh.f32 %v906_v50 }
 0x437   :  { %v2927_v12 = vpop.permute.xlu0 %1119 }
 0x438   :  { %v2636_v49 = vpop.eup %2635 }
 0x439   :  { %2291 = vmatprep.mubr.msk.f32.mxu0 %vm148_vm9, %v2636_v49  ;;  %v2638_v54 = vpop.eup %2637 }
 0x43a   :  { %v2640_v56 = vpop.eup %2639  ;;  %2292 = vmatmul.mubr.msk.f32.vlgmr.msra.gmra.mrb[8].mxu0 %vm148_vm9, %v2638_v54 }
 0x43b   :  { %2524 = vmatpush3.bf16.msra.mxu0 %v2523_v51  ;;  %2294 = vmatprep.mubr.msk.f32.mxu0 %vm148_vm9, %v2640_v56  ;;  %v2642_v60 = vpop.eup %2641  ;;  %v2921_v56 = vpop.permute.xlu1 %1095 }
 0x43c   :  { %2525 = vmatprep.subr.bf16.mxu0 %v2727_v1  ;;  %v2644_v61 = vpop.eup %2643 }
 0x43d   :  { %v2646_v3 = vpop.eup %2645 }
 0x43e   :  { %2295 = vmatmul.mubr.msk.f32.gmra.mrb[10].mxu0 %vm148_vm9, %v2642_v60  ;;  %v2648_v4 = vpop.eup %2647 }
 0x43f   :  { %2527 = vmatpush3.bf16.msra.mxu0 %v2526_v57  ;;  %2297 = vmatprep.mubr.msk.f32.mxu0 %vm148_vm9, %v2644_v61  ;;  %v2650_v9 = vpop.eup %2649  ;;  %v2930_v22 = vpop.permute.xlu1 %1111 }
 0x440   :  { %2528 = vmatprep.subr.bf16.mxu0 %v2727_v1 }
 0x442   :  { %2298 = vmatmul.mubr.msk.f32.gmra.mrb[12].mxu0 %vm148_vm9, %v2646_v3 }
 0x443   :  { %2530 = vmatpush3.bf16.msra.mxu0 %v2529_v62  ;;  %2300 = vmatprep.mubr.msk.f32.mxu0 %vm148_vm9, %v2648_v4 }
 0x444   :  { %2531 = vmatprep.subr.bf16.mxu0 %v2727_v1 }
 0x446   :  { %2301 = vmatmul.mubr.msk.f32.gmra.mrb[14].mxu0 %vm148_vm9, %v2650_v9 }
 0x447   :  { %2533 = vmatpush3.bf16.msra.mxu0 %v2532_v5  ;;  %2327 = vmatprep.mubr.msk.f32.mxu0 %vm2726_vm0, %v2725_v0 }
 0x448   :  { %2534 = vmatprep.subr.bf16.mxu0 %v2727_v1 }
 0x44b   :  { %2536 = vmatpush3.bf16.msra.mxu0 %v2535_v10 }
 0x44c   :  { %2537 = vmatprep.subr.bf16.mxu0 %v2727_v1 }
 0x44f   :  { %2539 = vmatpush3.bf16.msra.mxu0 %v2538_v13 }
 0x450   :  { %2540 = vmatprep.subr.bf16.mxu0 %v2727_v1 }
 0x452   :  { %2328 = vmatmul.mubr.msk.f32.vlgmr.msra.gmra.mrb[16].mxu0 %vm651_vm11, %v2840_v29 }
 0x453   :  { %2346 = vmatprep.mubr.msk.f32.mxu0 %vm2726_vm0, %v2725_v0  ;;  %2542 = vmatpush3.bf16.msra.mxu0 %v2541_v17 }
 0x454   :  { %2543 = vmatprep.subr.bf16.mxu0 %v2727_v1 }
 0x457   :  { %2545 = vmatpush3.bf16.msra.mxu0 %v2544_v20 }
 0x458   :  { %2546 = vmatprep.subr.bf16.mxu0 %v2727_v1 }
 0x45b   :  { %2548 = vmatpush3.bf16.msra.mxu0 %v2547_v23 }
 0x45c   :  { %2549 = vmatprep.subr.bf16.mxu0 %v2727_v1 }
 0x45f   :  { %2551 = vmatpush3.bf16.msra.mxu0 %v2550_v25 }
 0x460   :  { %2586 = vmatprep.subr.bf16.mxu0 %v2727_v1 }
 0x50d   :  { %v2293_v30 = vpop.f32.mrb[8].mxu0 }
 0x50e   :  { %v1024_v31 = vadd.f32 %v2293_v30, %v1996_v28  ;;  %v1018_v32 = vpop.f32.mrb[9].mxu0 }
 0x50f   :  { %v1019_v34 = vadd.f32 %v1996_v28, %v1018_v32 }
 0x510   :  { %v1122_v35 = vadd.f32 %v2904_v26, %v1024_v31 }
 0x511   :  { %v1121_v37 = vadd.f32 %v2906_v27, %v1019_v34  ;;  %v2296_v38 = vpop.f32.mrb[10].mxu0 }
 0x512   :  { %v1136_v39 = vsel %vm148_vm9, %v1122_v35, -inf  ;;  %v1034_v40 = vadd.f32 %v2296_v38, %v1996_v28  ;;  %v1028_v41 = vpop.f32.mrb[11].mxu0 }
 0x513   :  { %v1129_v42 = vsel %vm148_vm9, %v1121_v37, -inf  ;;  %v1137_v43 = vrot.slane %v1136_v39, 4  ;;  %v1029_v44 = vadd.f32 %v1996_v28, %v1028_v41 }
 0x514   :  { %v1130_v45 = vrot.slane %v1129_v42, 4  ;;  %v1124_v46 = vadd.f32 %v2908_v33, %v1034_v40 }
 0x515   :  { %v1138_v48 = vmax.f32 %v1136_v39, %v1137_v43  ;;  %v1123_v49 = vadd.f32 %v2911_v36, %v1029_v44  ;;  %v2299_v50 = vpop.f32.mrb[12].mxu0 }
 0x516   :  { %v1131_v51 = vmax.f32 %v1129_v42, %v1130_v45  ;;  %v1150_v52 = vsel %vm148_vm9, %v1124_v46, -inf  ;;  %v1044_v53 = vadd.f32 %v2299_v50, %v1996_v28  ;;  %v1038_v54 = vpop.f32.mrb[13].mxu0 }
 0x517   :  { %v1139_v57 = vrot.slane %v1138_v48, 2  ;;  %v1143_v58 = vsel %vm148_vm9, %v1123_v49, -inf  ;;  %v1151_v59 = vrot.slane %v1150_v52, 4  ;;  %v1039_v60 = vadd.f32 %v1996_v28, %v1038_v54 }
 0x518   :  { %v1132_v61 = vrot.slane %v1131_v51, 2  ;;  %v1144_v62 = vrot.slane %v1143_v58, 4  ;;  %v1126_v63 = vadd.f32 %v2917_v47, %v1044_v53 }
 0x519   :  { %v1140_v2 = vmax.f32 %v1138_v48, %v1139_v57  ;;  %v1152_v3 = vmax.f32 %v1150_v52, %v1151_v59  ;;  %v1125_v4 = vadd.f32 %v2921_v56, %v1039_v60  ;;  %v2302_v5 = vpop.f32.mrb[14].mxu0 }
 0x51a   :  { %v1133_v7 = vmax.f32 %v1131_v51, %v1132_v61  ;;  %v1145_v8 = vmax.f32 %v1143_v58, %v1144_v62  ;;  %v1164_v9 = vsel %vm148_vm9, %v1126_v63, -inf  ;;  %v1054_v10 = vadd.f32 %v2302_v5, %v1996_v28  ;;  %v1048_v11 = vpop.f32.mrb[15].mxu0  ;;  %v2941_v5 = vpop.xlane.xlu1 %46 }
 0x51b   :  { %v1141_v13 = vrot.slane %v1140_v2, 1  ;;  %v1153_v14 = vrot.slane %v1152_v3, 2  ;;  %v1157_v15 = vsel %vm148_vm9, %v1125_v4, -inf  ;;  %v1165_v17 = vrot.slane %v1164_v9, 4 }
 0x51c   :  { %v1134_v18 = vrot.slane %v1133_v7, 1  ;;  %v1146_v19 = vrot.slane %v1145_v8, 2  ;;  %v1158_v20 = vrot.slane %v1157_v15, 4  ;;  %v1049_v21 = vadd.f32 %v1996_v28, %v1048_v11 }
 0x51d   :  { %v1142_v23 = vmax.f32 %v1140_v2, %v1141_v13  ;;  %v1154_v24 = vmax.f32 %v1152_v3, %v1153_v14  ;;  %v1166_v6 = vmax.f32 %v1164_v9, %v1165_v17  ;;  %v1128_v25 = vadd.f32 %v2927_v12, %v1054_v10  ;;  %v1492_v14 = vld [vmem:[#allocation4 + $0x270] sm:$0xff] }
 0x51e   :  { %v1135_v30 = vmax.f32 %v1133_v7, %v1134_v18  ;;  %v1147_v31 = vmax.f32 %v1145_v8, %v1146_v19  ;;  %v1159_v32 = vmax.f32 %v1157_v15, %v1158_v20  ;;  %v1127_v34 = vadd.f32 %v2930_v22, %v1049_v21  ;;  %v1493_v15 = vld [vmem:[#allocation4 + $0x278] sm:$0xff]  ;;  %v1494_v20 = vld [vmem:[#allocation4 + $0x280] sm:$0xff]  ;;  %v1495_v21 = vld [vmem:[#allocation4 + $0x288] sm:$0xff] }
 0x51f   :  { %v1155_v35 = vrot.slane %v1154_v24, 1  ;;  %v1167_v37 = vrot.slane %v1166_v6, 2  ;;  %v1178_v38 = vsel %vm148_vm9, %v1128_v25, -inf  ;;  %vm48_vm5 = vcmp.gt.f32.partialorder %v2941_v5, -1.0 }
 0x520   :  { %v1196_v39 = vsel %vm1195_vm13, %v1142_v23, %v1135_v30  ;;  %v1148_v40 = vrot.slane %v1147_v31, 1  ;;  %v1160_v28 = vrot.slane %v1159_v32, 2  ;;  %v1171_v41 = vsel %vm148_vm9, %v1127_v34, -inf  ;;  %v1498_v30 = vld [vmem:[#allocation4 + $0x2a0] sm:$0xff]  ;;  %v2007_v34 = vld [vmem:[#allocation4 + $0x268] ss:$0 sm:$0xff] }
 0x521   :  { %v1168_v42 = vmax.f32 %v1166_v6, %v1167_v37  ;;  %v1172_v43 = vrot.slane %v1171_v41, 4  ;;  %v1179_v44 = vrot.slane %v1178_v38, 4  ;;  %v1156_v48 = vmax.f32 %v1154_v24, %v1155_v35  ;;  %v1496_v24 = vld [vmem:[#allocation4 + $0x290] sm:$0xff]  ;;  %v1497_v6 = vld [vmem:[#allocation4 + $0x298] sm:$0xff] }
 0x522   :  { %v1149_v45 = vmax.f32 %v1147_v31, %v1148_v40  ;;  %v1161_v46 = vmax.f32 %v1159_v32, %v1160_v28  ;;  %v2552_v17 = vpack.c.bf16 %v1493_v15, %v1492_v14  ;;  %v2556_v23 = vpack.c.bf16 %v1495_v21, %v1494_v20  ;;  %v1499_v31 = vld [vmem:[#allocation4 + $0x2a8] sm:$0xff]  ;;  %v1727_v15 = vld [vmem:[#allocation4 + $0x310] sm:$0xff]  ;;  %v1729_v20 = vld [vmem:[#allocation4 + $0x320] sm:$0xff] }
 0x523   :  { %v1169_v49 = vrot.slane %v1168_v42, 1  ;;  %v1173_v50 = vmax.f32 %v1171_v41, %v1172_v43  ;;  %v1180_v51 = vmax.f32 %v1178_v38, %v1179_v44  ;;  %v2560_v25 = vpack.c.bf16 %v1497_v6, %v1496_v24  ;;  %v1726_v14 = vld [vmem:[#allocation4 + $0x308] sm:$0xff] }
 0x524   :  { %v1162_v52 = vrot.slane %v1161_v46, 1  ;;  %v1198_v53 = vsel %vm1197_vm14, %v1149_v45, %v1196_v39  ;;  %2553 = vmatprep.subr.bf16.mxu1 %v2552_v17  ;;  %v2564_v32 = vpack.c.bf16 %v1499_v31, %v1498_v30  ;;  %v1730_v6 = vld [vmem:[#allocation4 + $0x328] sm:$0xff] }
 0x525   :  { %v1174_v54 = vrot.slane %v1173_v50, 2  ;;  %v1181_v57 = vrot.slane %v1180_v51, 2  ;;  %v1200_v58 = vsel %vm1199_vm15, %v1156_v48, %v1198_v53  ;;  %v1170_v60 = vmax.f32 %v1168_v42, %v1169_v49  ;;  %2555 = vmatpush3.bf16.msra.mxu1 %v2552_v17 }
 0x526   :  { %v1163_v59 = vmax.f32 %v1161_v46, %v1162_v52  ;;  %2557 = vmatprep.subr.bf16.mxu1 %v2556_v23 }
 0x527   :  { %v1175_v61 = vmax.f32 %v1173_v50, %v1174_v54  ;;  %v1182_v62 = vmax.f32 %v1180_v51, %v1181_v57 }
 0x528   :  { %v1202_v63 = vsel %vm1201_vm1, %v1163_v59, %v1200_v58 }
 0x529   :  { %v1176_v2 = vrot.slane %v1175_v61, 1  ;;  %v1183_v3 = vrot.slane %v1182_v62, 1  ;;  %v1204_v4 = vsel %vm1203_vm2, %v1170_v60, %v1202_v63  ;;  %2559 = vmatpush3.bf16.msra.mxu1 %v2556_v23 }
 0x52a   :  { %2561 = vmatprep.subr.bf16.mxu1 %v2560_v25 }
 0x52b   :  { %v1177_v7 = vmax.f32 %v1175_v61, %v1176_v2  ;;  %v1184_v8 = vmax.f32 %v1182_v62, %v1183_v3 }
 0x52d   :  { %v1206_v9 = vsel %vm1205_vm3, %v1177_v7, %v1204_v4  ;;  %2563 = vmatpush3.bf16.msra.mxu1 %v2560_v25  ;;  %v1731_v25 = vld [vmem:[#allocation4 + $0x330] sm:$0xff] }
 0x52e   :  { %v1208_v10 = vsel %vm1207_vm4, %v1184_v8, %v1206_v9  ;;  %2565 = vmatprep.subr.bf16.mxu1 %v2564_v32  ;;  %v1724_v8 = vld [vmem:[#allocation4 + $0x2f8] sm:$0xff]  ;;  %v1725_v9 = vld [vmem:[#allocation4 + $0x300] sm:$0xff] }
 0x52f   :  { %v1210_v11 = vsel %vm48_vm5, %v1208_v10, 0.0 }
 0x530   :  { %2651 = vtanh.f32 %v1210_v11 }
 0x531   :  { %2567 = vmatpush3.bf16.msra.mxu1 %v2564_v32  ;;  %v2578_v32 = vpack.c.bf16 %v1731_v25, %v1730_v6 }
 0x532   :  { %2568 = vmatprep.subr.bf16.mxu1 %v2727_v1 }
 0x53a   :  { %v2652_v13 = vpop.eup %2651 }
 0x53b   :  { %2347 = vmatmul.mubr.msk.f32.vlgmr.msra.gmra.mrb[16].mxu0 %vm148_vm9, %v2652_v13  ;;  %v2569_v13 = vpack.c.bf16 %v1725_v9, %v1724_v8 }
 0x53c   :  { %2420 = vmatprep.mubr.msk.f32.mxu0 %vm2726_vm0, %v2725_v0 }
 0x60e   :  { %v1371_v18 = vpop.f32.mrb[16].mxu0 }
 0x60f   :  { %1376 = vrot.lane.b32.xlu0 %v1371_v18, %s2730_s1  ;;  %v2348_v19 = vpop.f32.mrb[17].mxu0 }
 0x610   :  { %v1728_v19 = vld [vmem:[#allocation4 + $0x318] sm:$0xff] }
 0x611   :  { %v2575_v24 = vpack.c.bf16 %v1729_v20, %v1728_v19 }
 0x681   :  { %v1377_v35 = vpop.permute.xlu0 %1376 }
 0x682   :  { %v1379_v37 = vsub.f32 %v1371_v18, %v1377_v35 }
 0x684   :  { %v1385_v38 = vadd.f32 %v2007_v34, %v1379_v37  ;;  %v1732_v34 = vld [vmem:[#allocation4 + $0x338] sm:$0xff] }
 0x686   :  { %v1387_v39 = vcombine.high %v1385_v38, %v1385_v38  ;;  %v1394_v40 = vrot.slane %v1385_v38, %v2864_v16 }
 0x688   :  { %v1401_v28 = vrot.slane %v1387_v39, %v2864_v16  ;;  %v1402_v41 = vcombine.high %v1394_v40, %v1394_v40  ;;  %v1410_v42 = vrot.slane %v1394_v40, %v2864_v16  ;;  %v1734_v39 = vld [vmem:[#allocation4 + $0x348] sm:$0xff]  ;;  %v1735_v40 = vld [vmem:[#allocation4 + $0x350] sm:$0xff] }
 0x68a   :  { %v1403_v43 = vcombine.high %v1401_v28, %v1401_v28  ;;  %v1417_v44 = vrot.slane %v1401_v28, %v2864_v16  ;;  %v1424_v45 = vrot.slane %v1402_v41, %v2864_v16  ;;  %v1432_v46 = vcombine.high %v1410_v42, %v1410_v42  ;;  %v1716_v41 = vld [vmem:[#allocation4 + $0x2b8] sm:$0xff] }
 0x68b   :  { %v1439_v48 = vrot.slane %v1410_v42, %v2852_v55  ;;  %v2584_v28 = vpack.c.bf16 %v1735_v40, %v1734_v39  ;;  %v1717_v42 = vld [vmem:[#allocation4 + $0x2c0] sm:$0xff] }
 0x68c   :  { %v1434_v49 = vcombine.high %v1424_v45, %v1424_v45  ;;  %v1443_v50 = vrot.slane %v1424_v45, %v2852_v55  ;;  %v1431_v51 = vrot.slane %v1403_v43, %v2864_v16  ;;  %v1447_v52 = vrot.slane %v1432_v46, %v2852_v55  ;;  %v1719_v45 = vld [vmem:[#allocation4 + $0x2d0] sm:$0xff] }
 0x68d   :  { %v1476_v53 = vadd.f32 %v1439_v48, %v1377_v35  ;;  %v1433_v54 = vcombine.high %v1417_v44, %v1417_v44  ;;  %v1455_v58 = vrot.slane %v1417_v44, %v2852_v55  ;;  %v2587_v43 = vpack.c.bf16 %v1717_v42, %v1716_v41  ;;  %v1718_v44 = vld [vmem:[#allocation4 + $0x2c8] sm:$0xff]  ;;  %v1720_v48 = vld [vmem:[#allocation4 + $0x2d8] sm:$0xff] }
 0x68e   :  { %v1451_v57 = vrot.slane %v1434_v49, %v2852_v55  ;;  %v1477_v59 = vadd.f32 %v1443_v50, %v1377_v35  ;;  %v1478_v60 = vadd.f32 %v1447_v52, %v1377_v35  ;;  %v1435_v61 = vcombine.high %v1431_v51, %v1431_v51  ;;  %v1721_v49 = vld [vmem:[#allocation4 + $0x2e0] sm:$0xff]  ;;  %v1723_v52 = vld [vmem:[#allocation4 + $0x2f0] sm:$0xff] }
 0x68f   :  { %2653 = vtanh.f32 %v1476_v53  ;;  %v1459_v62 = vrot.slane %v1431_v51, %v2852_v55  ;;  %v1463_v2 = vrot.slane %v1433_v54, %v2852_v55  ;;  %v1480_v3 = vadd.f32 %v1455_v58, %v1377_v35  ;;  %2588 = vmatpush3.bf16.msra.mxu0 %v2587_v43  ;;  %v1722_v51 = vld [vmem:[#allocation4 + $0x2e8] sm:$0xff] }
 0x690   :  { %v1479_v63 = vadd.f32 %v1451_v57, %v1377_v35  ;;  %2655 = vtanh.f32 %v1477_v59  ;;  %v1467_v16 = vrot.slane %v1435_v61, %v2852_v55  ;;  %v2572_v55 = vpack.c.bf16 %v1727_v15, %v1726_v14  ;;  %2589 = vmatprep.subr.bf16.mxu0 %v2727_v1 }
 0x691   :  { %2657 = vtanh.f32 %v1478_v60  ;;  %v1481_v4 = vadd.f32 %v1459_v62, %v1377_v35  ;;  %v1482_v7 = vadd.f32 %v1463_v2, %v1377_v35  ;;  %v2590_v46 = vpack.c.bf16 %v1719_v45, %v1718_v44 }
 0x692   :  { %2659 = vtanh.f32 %v1479_v63  ;;  %v1483_v11 = vadd.f32 %v1467_v16, %v1377_v35  ;;  %v1733_v35 = vld [vmem:[#allocation4 + $0x340] sm:$0xff]  ;;  %v2593_v50 = vpack.c.bf16 %v1721_v49, %v1720_v48  ;;  %v2596_v53 = vpack.c.bf16 %v1723_v52, %v1722_v51 }
 0x693   :  { %2661 = vtanh.f32 %v1480_v3  ;;  %v2581_v38 = vpack.c.bf16 %v1733_v35, %v1732_v34  ;;  %2591 = vmatpush3.bf16.msra.mxu0 %v2590_v46 }
 0x694   :  { %2663 = vtanh.f32 %v1481_v4  ;;  %2592 = vmatprep.subr.bf16.mxu0 %v2727_v1 }
 0x695   :  { %2665 = vtanh.f32 %v1482_v7 }
 0x696   :  { %2667 = vtanh.f32 %v1483_v11 }
 0x697   :  { %2594 = vmatpush3.bf16.msra.mxu0 %v2593_v50 }
 0x698   :  { %2595 = vmatprep.subr.bf16.mxu0 %v2727_v1 }
 0x699   :  { %v2654_v10 = vpop.eup %2653 }
 0x69a   :  { %2365 = vmatprep.mubr.msk.f32.mxu1 %vm148_vm9, %v2654_v10  ;;  %v2656_v17 = vpop.eup %2655 }
 0x69b   :  { %v2658_v18 = vpop.eup %2657  ;;  %2366 = vmatmul.mubr.msk.f32.vlgmr.msra.gmra.mrb[8].mxu1 %vm148_vm9, %v2656_v17  ;;  %2597 = vmatpush3.bf16.msra.mxu0 %v2596_v53 }
 0x69c   :  { %2570 = vmatpush3.bf16.msra.mxu1 %v2569_v13  ;;  %2368 = vmatprep.mubr.msk.f32.mxu1 %vm148_vm9, %v2658_v18  ;;  %v2660_v21 = vpop.eup %2659 }
 0x69d   :  { %2571 = vmatprep.subr.bf16.mxu1 %v2727_v1  ;;  %v2662_v23 = vpop.eup %2661  ;;  %2598 = vmatprep.subr.bf16.mxu0 %v2727_v1 }
 0x69e   :  { %v2664_v30 = vpop.eup %2663 }
 0x69f   :  { %2369 = vmatmul.mubr.msk.f32.gmra.mrb[10].mxu1 %vm148_vm9, %v2660_v21  ;;  %v2666_v31 = vpop.eup %2665 }
 0x6a0   :  { %2573 = vmatpush3.bf16.msra.mxu1 %v2572_v55  ;;  %2371 = vmatprep.mubr.msk.f32.mxu1 %vm148_vm9, %v2662_v23  ;;  %v2668_v37 = vpop.eup %2667 }
 0x6a1   :  { %2574 = vmatprep.subr.bf16.mxu1 %v2727_v1 }
 0x6a3   :  { %2372 = vmatmul.mubr.msk.f32.gmra.mrb[12].mxu1 %vm148_vm9, %v2664_v30 }
 0x6a4   :  { %2576 = vmatpush3.bf16.msra.mxu1 %v2575_v24  ;;  %2374 = vmatprep.mubr.msk.f32.mxu1 %vm148_vm9, %v2666_v31 }
 0x6a5   :  { %2577 = vmatprep.subr.bf16.mxu1 %v2727_v1 }
 0x6a7   :  { %2375 = vmatmul.mubr.msk.f32.gmra.mrb[14].mxu1 %vm148_vm9, %v2668_v37 }
 0x6a8   :  { %2579 = vmatpush3.bf16.msra.mxu1 %v2578_v32  ;;  %2401 = vmatprep.mubr.msk.f32.mxu1 %vm2726_vm0, %v2725_v0 }
 0x6a9   :  { %2580 = vmatprep.subr.bf16.mxu1 %v2727_v1 }
 0x6ac   :  { %2582 = vmatpush3.bf16.msra.mxu1 %v2581_v38 }
 0x6ad   :  { %2583 = vmatprep.subr.bf16.mxu1 %v2727_v1 }
 0x6b0   :  { %2585 = vmatpush3.bf16.msra.mxu1 %v2584_v28 }
 0x6b3   :  { %2402 = vmatmul.mubr.msk.f32.vlgmr.msra.gmra.mrb[16].mxu1 %vm651_vm11, %v2840_v29  ;;  %v2008_v29 = vld [vmem:[#allocation4 + $0x2b0] ss:$0 sm:$0xff] }
 0x76e   :  { %v2367_v54 = vpop.f32.mrb[8].mxu1 }
 0x76f   :  { %v1601_v57 = vadd.f32 %v2367_v54, %v2008_v29  ;;  %v1595_v58 = vpop.f32.mrb[9].mxu1 }
 0x770   :  { %v1596_v59 = vadd.f32 %v2008_v29, %v1595_v58 }
 0x771   :  { %v1635_v60 = vadd.f32 %v1601_v57, %v2904_v26 }
 0x772   :  { %v1634_v61 = vadd.f32 %v1596_v59, %v2906_v27  ;;  %v2370_v62 = vpop.f32.mrb[10].mxu1 }
 0x773   :  { %v1649_v63 = vsel %vm148_vm9, %v1635_v60, -inf  ;;  %v1611_v2 = vadd.f32 %v2370_v62, %v2008_v29  ;;  %v1605_v3 = vpop.f32.mrb[11].mxu1 }
 0x774   :  { %v1650_v16 = vrot.slane %v1649_v63, 4  ;;  %v1642_v4 = vsel %vm148_vm9, %v1634_v61, -inf  ;;  %v1606_v7 = vadd.f32 %v2008_v29, %v1605_v3 }
 0x775   :  { %v1643_v8 = vrot.slane %v1642_v4, 4  ;;  %v1637_v9 = vadd.f32 %v1611_v2, %v2908_v33 }
 0x776   :  { %v1651_v10 = vmax.f32 %v1649_v63, %v1650_v16  ;;  %v1636_v11 = vadd.f32 %v1606_v7, %v2911_v36  ;;  %v2373_v13 = vpop.f32.mrb[12].mxu1 }
 0x777   :  { %v1644_v14 = vmax.f32 %v1642_v4, %v1643_v8  ;;  %v1663_v26 = vsel %vm148_vm9, %v1637_v9, -inf  ;;  %v1621_v27 = vadd.f32 %v2373_v13, %v2008_v29  ;;  %v1615_v15 = vpop.f32.mrb[13].mxu1 }
 0x778   :  { %v1652_v17 = vrot.slane %v1651_v10, 2  ;;  %v1664_v18 = vrot.slane %v1663_v26, 4  ;;  %v1656_v55 = vsel %vm148_vm9, %v1636_v11, -inf  ;;  %v1616_v19 = vadd.f32 %v2008_v29, %v1615_v15 }
 0x779   :  { %v1645_v20 = vrot.slane %v1644_v14, 2  ;;  %v1657_v21 = vrot.slane %v1656_v55, 4  ;;  %v1639_v23 = vadd.f32 %v1621_v27, %v2917_v47 }
 0x77a   :  { %v1653_v24 = vmax.f32 %v1651_v10, %v1652_v17  ;;  %v1665_v33 = vmax.f32 %v1663_v26, %v1664_v18  ;;  %v1638_v6 = vadd.f32 %v1616_v19, %v2921_v56  ;;  %v2376_v36 = vpop.f32.mrb[14].mxu1 }
 0x77b   :  { %v1646_v25 = vmax.f32 %v1644_v14, %v1645_v20  ;;  %v1658_v30 = vmax.f32 %v1656_v55, %v1657_v21  ;;  %v1677_v31 = vsel %vm148_vm9, %v1639_v23, -inf  ;;  %v1631_v32 = vadd.f32 %v2376_v36, %v2008_v29  ;;  %v1625_v34 = vpop.f32.mrb[15].mxu1 }
 0x77c   :  { %v1654_v35 = vrot.slane %v1653_v24, 1  ;;  %v1666_v37 = vrot.slane %v1665_v33, 2  ;;  %v1678_v38 = vrot.slane %v1677_v31, 4  ;;  %v1670_v39 = vsel %vm148_vm9, %v1638_v6, -inf  ;;  %v1887_v6 = vld [vmem:[#allocation4 + $0x368] sm:$0xff] }
 0x77d   :  { %v1647_v40 = vrot.slane %v1646_v25, 1  ;;  %v1659_v28 = vrot.slane %v1658_v30, 2  ;;  %v1671_v41 = vrot.slane %v1670_v39, 4  ;;  %v1641_v47 = vadd.f32 %v1631_v32, %v2927_v12  ;;  %v1890_v32 = vld [vmem:[#allocation4 + $0x380] sm:$0xff] }
 0x77e   :  { %v1655_v42 = vmax.f32 %v1653_v24, %v1654_v35  ;;  %v1667_v43 = vmax.f32 %v1665_v33, %v1666_v37  ;;  %v1679_v56 = vmax.f32 %v1677_v31, %v1678_v38  ;;  %v1626_v44 = vadd.f32 %v2008_v29, %v1625_v34  ;;  %v1886_v33 = vld [vmem:[#allocation4 + $0x360] sm:$0xff]  ;;  %v1891_v34 = vld [vmem:[#allocation4 + $0x388] sm:$0xff]  ;;  %v1892_v35 = vld [vmem:[#allocation4 + $0x390] sm:$0xff] }
 0x77f   :  { %v1648_v45 = vmax.f32 %v1646_v25, %v1647_v40  ;;  %v1660_v46 = vmax.f32 %v1658_v30, %v1659_v28  ;;  %v1672_v48 = vmax.f32 %v1670_v39, %v1671_v41  ;;  %v1691_v49 = vsel %vm148_vm9, %v1641_v47, -inf  ;;  %v1888_v25 = vld [vmem:[#allocation4 + $0x370] sm:$0xff]  ;;  %v1889_v30 = vld [vmem:[#allocation4 + $0x378] sm:$0xff] }
 0x780   :  { %v1668_v50 = vrot.slane %v1667_v43, 1  ;;  %v1680_v51 = vrot.slane %v1679_v56, 2  ;;  %v1692_v52 = vrot.slane %v1691_v49, 4  ;;  %v1640_v53 = vadd.f32 %v1626_v44, %v2930_v22  ;;  %v1893_v37 = vld [vmem:[#allocation4 + $0x398] sm:$0xff] }
 0x781   :  { %v1706_v54 = vsel %vm1195_vm13, %v1655_v42, %v1648_v45  ;;  %v1661_v57 = vrot.slane %v1660_v46, 1  ;;  %v1673_v58 = vrot.slane %v1672_v48, 2  ;;  %v2599_v36 = vpack.c.bf16 %v1887_v6, %v1886_v33  ;;  %v2019_v39 = vld [vmem:[#allocation4 + $0x358] ss:$0 sm:$0xff]  ;;  %v2020_v42 = vld [vmem:[#allocation4 + $0x3a0] ss:$0 sm:$0xff] }
 0x782   :  { %v1681_v59 = vmax.f32 %v1679_v56, %v1680_v51  ;;  %v1693_v12 = vmax.f32 %v1691_v49, %v1692_v52  ;;  %v1684_v60 = vsel %vm148_vm9, %v1640_v53, -inf  ;;  %v1669_v63 = vmax.f32 %v1667_v43, %v1668_v50 }
 0x783   :  { %v1662_v61 = vmax.f32 %v1660_v46, %v1661_v57  ;;  %v1674_v29 = vmax.f32 %v1672_v48, %v1673_v58  ;;  %v1685_v62 = vrot.slane %v1684_v60, 4  ;;  %v2602_v31 = vpack.c.bf16 %v1889_v30, %v1888_v25 }
 0x784   :  { %v1682_v2 = vrot.slane %v1681_v59, 1  ;;  %v1694_v3 = vrot.slane %v1693_v12, 2  ;;  %v2605_v5 = vpack.c.bf16 %v1891_v34, %v1890_v32  ;;  %v2608_v38 = vpack.c.bf16 %v1893_v37, %v1892_v35 }
 0x785   :  { %v1707_v16 = vsel %vm1197_vm14, %v1662_v61, %v1706_v54  ;;  %v1675_v4 = vrot.slane %v1674_v29, 1  ;;  %v1686_v7 = vmax.f32 %v1684_v60, %v1685_v62 }
 0x786   :  { %v1708_v22 = vsel %vm1199_vm15, %v1669_v63, %v1707_v16  ;;  %v1695_v8 = vmax.f32 %v1693_v12, %v1694_v3  ;;  %v1802_v9 = vpop.f32.mrb[16].mxu1  ;;  %v1683_v14 = vmax.f32 %v1681_v59, %v1682_v2 }
 0x787   :  { %v1676_v10 = vmax.f32 %v1674_v29, %v1675_v4  ;;  %v1687_v11 = vrot.slane %v1686_v7, 2  ;;  %v2403_v13 = vpop.f32.mrb[17].mxu1 }
 0x788   :  { %v1696_v15 = vrot.slane %v1695_v8, 1 }
 0x789   :  { %v1709_v26 = vsel %vm1201_vm1, %v1676_v10, %v1708_v22  ;;  %v1688_v27 = vmax.f32 %v1686_v7, %v1687_v11 }
 0x78a   :  { %v1710_v17 = vsel %vm1203_vm2, %v1683_v14, %v1709_v26  ;;  %v1697_v19 = vmax.f32 %v1695_v8, %v1696_v15 }
 0x78b   :  { %v1689_v18 = vrot.slane %v1688_v27, 1 }
 0x78d   :  { %v1690_v55 = vmax.f32 %v1688_v27, %v1689_v18 }
 0x78f   :  { %v1711_v20 = vsel %vm1205_vm3, %v1690_v55, %v1710_v17 }
 0x790   :  { %v1712_v21 = vsel %vm1207_vm4, %v1697_v19, %v1711_v20 }
 0x791   :  { %v1714_v23 = vsel %vm48_vm5, %v1712_v21, 0.0 }
 0x792   :  { %2669 = vtanh.f32 %v1714_v23 }
 0x79c   :  { %v2670_v24 = vpop.eup %2669 }
 0x79d   :  { %2421 = vmatmul.mubr.msk.f32.vlgmr.msra.gmra.mrb[18].mxu0 %vm148_vm9, %v2670_v24 }
 0x79e   :  { %2439 = vmatprep.mubr.msk.f32.mxu0 %vm2726_vm0, %v2725_v0  ;;  %2600 = vmatpush3.bf16.msra.mxu0 %v2599_v36 }
 0x79f   :  { %2601 = vmatprep.subr.bf16.mxu0 %v2727_v1 }
 0x7a2   :  { %2603 = vmatpush3.bf16.msra.mxu0 %v2602_v31 }
 0x7a3   :  { %2604 = vmatprep.subr.bf16.mxu0 %v2727_v1 }
 0x7a6   :  { %2606 = vmatpush3.bf16.msra.mxu0 %v2605_v5 }
 0x7a7   :  { %2607 = vmatprep.subr.bf16.mxu0 %v2727_v1 }
 0x7aa   :  { %2609 = vmatpush3.bf16.msra.mxu0 %v2608_v38 }
 0x870   :  { %v1875_v0 = vpop.f32.mrb[18].mxu0 }
 0x871   :  { %v1876_v40 = vadd.f32 %v1875_v0, %v1802_v9  ;;  %v2422_v28 = vpop.f32.mrb[19].mxu0 }
 0x873   :  { %v1884_v41 = vadd.f32 %v2019_v39, %v1876_v40 }
 0x875   :  { %2671 = vtanh.f32 %v1884_v41 }
 0x87f   :  { %v2672_v47 = vpop.eup %2671 }
 0x880   :  { %2440 = vmatmul.mubr.msk.f32.vlgmr.msra.gmra.mrb[20].mxu0 %vm148_vm9, %v2672_v47 }
 0x953   :  { %v1968_v43 = vpop.f32.mrb[20].mxu0 }
 0x954   :  { %v1969_v56 = vadd.f32 %v2020_v42, %v1968_v43  ;;  %v2441_v44 = vpop.f32.mrb[21].mxu0 }
 0x956   :  { %1972 = vst.msk [vmem:[%s3028_s4] sm:$0xff] %vm313_vm8, %v1969_v56 }
 0x957   :  { %1977 = vsyncpa [#allocation3], 1 }
 0x958   :  { %1978 = vsyncpa [#allocation5], 1 }

</bundles_post_ra>
